<compile_context>
chip_gen: v6e
topology: v6e:2x2x1
jax: 0.10.0
libtpu: 0.0.40
codegen_flags: <defaults>
</compile_context>

<pallas_src>
import jax
import jax.numpy as jnp
from jax.experimental import pallas as pl
from jax.experimental.pallas import tpu as pltpu


def lstm_kernel(tok_ref, emb_ref, h0_ref, c0_ref, wih_ref, whh_ref, b_ref,
                hn_ref, cn_ref, x_buf, copy_sem):
    """Fused embedding-gather + LSTM recurrence (single invocation, no grid).

    tok_ref  : (T*B,)  int32 token ids, time-major, in SMEM
    emb_ref  : (V, E)  embedding table, left in HBM (pl.ANY) - gathered by DMA
    h0_ref   : (Bp, H) initial hidden state (batch padded to 8 sublanes)
    c0_ref   : (Bp, H) initial cell state
    wih_ref  : (E, 4H) W_ih^T, i/f/o columns pre-scaled by 0.5
    whh_ref  : (H, 4H) W_hh^T, i/f/o columns pre-scaled by 0.5
    b_ref    : (1, 4H) b_ih + b_hh, i/f/o columns pre-scaled by 0.5
    hn_ref   : (Bp, H) output: final hidden state
    cn_ref   : (Bp, H) output: final cell state
    x_buf    : (T*Bp, E) VMEM scratch holding the gathered embedded sequence
    copy_sem : (T*B,)  DMA semaphores, one per gathered row
    """
    Bp, H = h0_ref.shape
    TBp, _E = x_buf.shape
    T = TBp // Bp
    nB = tok_ref.shape[0] // T          # real (unpadded) batch size

    # Padded-batch rows must see x == 0 (bias-only gates); real rows are DMA-overwritten.
    x_buf[...] = jnp.zeros_like(x_buf)

    # Fused embedding gather: one small async row-DMA per (t, b) token, all in flight at
    # once.  Scalar SMEM token reads all happen before any .wait() (keeps sst->sld fwd).
    for i in range(T * nB):
        row = (i // nB) * Bp + (i % nB)
        tok = tok_ref[i]
        pltpu.make_async_copy(emb_ref.at[pl.ds(tok, 1)],
                              x_buf.at[pl.ds(row, 1)],
                              copy_sem.at[i]).start()
    for i in range(T * nB):
        row = (i // nB) * Bp + (i % nB)
        # Only shapes matter for the wait; use a constant src index.
        pltpu.make_async_copy(emb_ref.at[pl.ds(0, 1)],
                              x_buf.at[pl.ds(row, 1)],
                              copy_sem.at[i]).wait()

    # Hoisted input projection + bias: one MXU pass over all timesteps.
    xproj = (jnp.dot(x_buf[...], wih_ref[...], preferred_element_type=jnp.float32)
             + b_ref[...])                                    # (T*Bp, 4H)

    whh = whh_ref[...]
    h = h0_ref[...]
    c = c0_ref[...]

    # Fully unrolled recurrence (T is small & static): only the recurrent matmul per step.
    for t in range(T):
        gates = xproj[t * Bp:(t + 1) * Bp, :] + jnp.dot(
            h, whh, preferred_element_type=jnp.float32)       # (Bp, 4H)

        # Single EUP pass over the whole tile: i/f/o columns were pre-scaled by 0.5 so
        # sigmoid(z) = 0.5*tanh(z/2) + 0.5, while g = tanh(z) falls out directly.
        act = jnp.tanh(gates)
        i_g = 0.5 * act[:, 0 * H:1 * H] + 0.5
        f_g = 0.5 * act[:, 1 * H:2 * H] + 0.5
        g_g = act[:, 2 * H:3 * H]
        o_g = 0.5 * act[:, 3 * H:4 * H] + 0.5

        c = f_g * c + i_g * g_g
        h = o_g * jnp.tanh(c)

    hn_ref[...] = h
    cn_ref[...] = c


@jax.jit
def lstm_classifier_forward(tokens, h0, c0, params):
    """tokens: (B, T) int32; h0, c0: (1, B, H) float32 (n_layers == 1).

    Returns (logits (B, 2), (h_n (1, B, H), c_n (1, B, H))).
    """
    emb = params["embedding"]               # (V, E)
    w_ih_t = params["w_ih_t"]               # (E, 4H)
    w_hh_t = params["w_hh_t"]               # (H, 4H)
    b_gates = params["b_gates"]             # (1, 4H)  == b_ih + b_hh
    w_cls_t = params["w_cls_t"]             # (H, 2)
    b_cls = params["b_cls"]                 # (1, 2)

    B, T = tokens.shape
    E = emb.shape[1]
    H = w_hh_t.shape[0]

    # Pad batch to a multiple of 8 sublanes.
    Bp = max(8, ((B + 7) // 8) * 8)

    # Time-major flat token ids for the in-kernel gather (b varies fastest per timestep).
    tok_flat = jnp.transpose(tokens, (1, 0)).reshape(T * B).astype(jnp.int32)

    if Bp != B:
        h0_2d = jnp.pad(h0[0], ((0, Bp - B), (0, 0)))
        c0_2d = jnp.pad(c0[0], ((0, Bp - B), (0, 0)))
    else:
        h0_2d, c0_2d = h0[0], c0[0]

    # Pre-scale the i/f/o gate columns by 0.5 so the kernel needs a single tanh pass:
    # sigmoid(z) = 0.5*tanh(z/2) + 0.5; the g (cell-candidate) columns stay unscaled.
    # Scaling by 0.5 is exact in FP, so this is a bit-faithful reformulation up to
    # transcendental rounding.  One-time O(E*4H) work outside the kernel.
    gscale = jnp.concatenate([jnp.full((2 * H,), 0.5, jnp.float32),
                              jnp.ones((H,), jnp.float32),
                              jnp.full((H,), 0.5, jnp.float32)])
    wih_k = w_ih_t * gscale[None, :]
    whh_k = w_hh_t * gscale[None, :]
    b_k = b_gates * gscale[None, :]

    vmem_spec = pl.BlockSpec(memory_space=pltpu.MemorySpace.VMEM)
    smem_spec = pl.BlockSpec(memory_space=pltpu.MemorySpace.SMEM)
    hbm_spec = pl.BlockSpec(memory_space=pl.ANY)

    hn_p, cn_p = pl.pallas_call(
        lstm_kernel,
        out_shape=(jax.ShapeDtypeStruct((Bp, H), jnp.float32),
                   jax.ShapeDtypeStruct((Bp, H), jnp.float32)),
        in_specs=[smem_spec,   # tokens
                  hbm_spec,    # embedding table (gathered via DMA in-kernel)
                  vmem_spec,   # h0
                  vmem_spec,   # c0
                  vmem_spec,   # W_ih^T (pre-scaled)
                  vmem_spec,   # W_hh^T (pre-scaled)
                  vmem_spec],  # bias   (pre-scaled)
        out_specs=(vmem_spec, vmem_spec),
        scratch_shapes=[pltpu.VMEM((T * Bp, E), jnp.float32),
                        pltpu.SemaphoreType.DMA((T * B,))],
    )(tok_flat, emb, h0_2d, c0_2d, wih_k, whh_k, b_k)

    h_n = hn_p[:B]
    c_n = cn_p[:B]

    # Classifier on the last LSTM output (dropout is identity in eval).  Kept outside the
    # kernel: a 2-wide output lane dim would force masked partial stores in the kernel.
    logits = h_n @ w_cls_t + b_cls

    return logits, (h_n[None], c_n[None])


def make_params(key, n_vocab, embed_size, h_size):
    ks = jax.random.split(key, 6)
    embedding = jax.random.normal(ks[0], (n_vocab, embed_size), jnp.float32)
    # PyTorch LSTM params: W_ih (4H, E), W_hh (4H, H), b_ih (4H,), b_hh (4H,)
    k = 1.0 / jnp.sqrt(h_size)
    w_ih = jax.random.uniform(ks[1], (4 * h_size, embed_size), jnp.float32, -k, k)
    w_hh = jax.random.uniform(ks[2], (4 * h_size, h_size), jnp.float32, -k, k)
    b_ih = jax.random.uniform(ks[3], (4 * h_size,), jnp.float32, -k, k)
    b_hh = jax.random.uniform(ks[4], (4 * h_size,), jnp.float32, -k, k)
    # classifier: xavier_normal weight (2, H), bias = 0.01
    std = jnp.sqrt(2.0 / (h_size + 2))
    w_cls = std * jax.random.normal(ks[5], (2, h_size), jnp.float32)
    b_cls = jnp.full((2,), 0.01, jnp.float32)
    return {
        "embedding": embedding,
        "w_ih_t": w_ih.T,                       # (E, 4H)
        "w_hh_t": w_hh.T,                       # (H, 4H)
        "b_gates": (b_ih + b_hh)[None, :],      # (1, 4H)
        "w_cls_t": w_cls.T,                     # (H, 2)
        "b_cls": b_cls[None, :],                # (1, 2)
    }


def reference_forward(tokens, h0, c0, params):
    """Pure-JAX reference matching PyTorch nn.LSTM + Linear (eval) semantics."""
    x = params["embedding"][tokens]             # (B, T, E)
    H = params["w_hh_t"].shape[0]

    def step(carry, x_t):
        h, c = carry
        gates = x_t @ params["w_ih_t"] + h @ params["w_hh_t"] + params["b_gates"]
        i = jax.nn.sigmoid(gates[:, 0 * H:1 * H])
        f = jax.nn.sigmoid(gates[:, 1 * H:2 * H])
        g = jnp.tanh(gates[:, 2 * H:3 * H])
        o = jax.nn.sigmoid(gates[:, 3 * H:4 * H])
        c_new = f * c + i * g
        h_new = o * jnp.tanh(c_new)
        return (h_new, c_new), h_new

    (h_n, c_n), _ = jax.lax.scan(step, (h0[0], c0[0]), jnp.transpose(x, (1, 0, 2)))
    logits = h_n @ params["w_cls_t"] + params["b_cls"]
    return logits, (h_n[None], c_n[None])


if __name__ == "__main__":
    n_vocab, embed_size, h_size = 50, 32, 32
    batch_size, seq_len = 1, 8

    key = jax.random.PRNGKey(0)
    k_param, k_tok = jax.random.split(key)

    params = make_params(k_param, n_vocab, embed_size, h_size)
    tokens = jax.random.randint(k_tok, (batch_size, seq_len), 0, n_vocab, jnp.int32)

    # init_hidden: zeros of shape (n_layers, B, H)
    h0 = jnp.zeros((1, batch_size, h_size), jnp.float32)
    c0 = jnp.zeros((1, batch_size, h_size), jnp.float32)

    logits, (h_n, c_n) = lstm_classifier_forward(tokens, h0, c0, params)
    jax.block_until_ready((logits, h_n, c_n))

    # sanity check against pure-JAX reference
    ref_logits, (ref_h, ref_c) = reference_forward(tokens, h0, c0, params)
    assert jnp.allclose(logits, ref_logits, atol=2e-4, rtol=1e-4), "logits mismatch"
    assert jnp.allclose(h_n, ref_h, atol=2e-4, rtol=1e-4), "h_n mismatch"
    assert jnp.allclose(c_n, ref_c, atol=2e-4, rtol=1e-4), "c_n mismatch"

    print("KERNEL_OK")
</pallas_src>

<mosaic_0001>
module attributes {stable_mosaic.version = 11 : i64} {
  func.func @lstm_kernel(%arg0: memref<8xi32, #tpu.memory_space<smem>>, %arg1: memref<50x32xf32, #tpu.memory_space<any>>, %arg2: memref<8x32xf32, #tpu.memory_space<vmem>>, %arg3: memref<8x32xf32, #tpu.memory_space<vmem>>, %arg4: memref<32x128xf32, #tpu.memory_space<vmem>>, %arg5: memref<32x128xf32, #tpu.memory_space<vmem>>, %arg6: memref<1x128xf32, #tpu.memory_space<vmem>>, %arg7: memref<8x32xf32, #tpu.memory_space<vmem>>, %arg8: memref<8x32xf32, #tpu.memory_space<vmem>>, %arg9: memref<64x32xf32, #tpu.memory_space<vmem>>, %arg10: memref<8x!tpu.dma_semaphore, #tpu.memory_space<semaphore_mem>>) attributes {dimension_semantics = [], scalar_prefetch = 0 : i64, scratch_operands = 2 : i64, tpu.core_type = #tpu.core_type<tc>} {
    %cst = arith.constant 0.000000e+00 : f32
    %0 = vector.broadcast %cst : f32 to vector<64x32xf32>
    %c0 = arith.constant 0 : index
    %c0_0 = arith.constant 0 : index
    %1 = vector.load %arg9[%c0, %c0_0] : memref<64x32xf32, #tpu.memory_space<vmem>>, vector<64x32xf32>
    tpu.vector_store %arg9[%c0, %c0_0], %0 {strides = array<i32>} : memref<64x32xf32, #tpu.memory_space<vmem>>, vector<64x32xf32>,
    %c0_1 = arith.constant 0 : index
    %2 = memref.load %arg0[%c0_1] : memref<8xi32, #tpu.memory_space<smem>>
    %c0_i32 = arith.constant 0 : i32
    %c0_i32_2 = arith.constant 0 : i32
    %3 = tpu.memref_slice %arg1[%2, %c0_i32_2] : memref<50x32xf32, #tpu.memory_space<any>> -> memref<1x32xf32, #tpu.memory_space<any>>
    %c0_i32_3 = arith.constant 0 : i32
    %c0_i32_4 = arith.constant 0 : i32
    %4 = tpu.memref_slice %arg9[%c0_i32_3, %c0_i32_4] : memref<64x32xf32, #tpu.memory_space<vmem>> -> memref<1x32xf32, #tpu.memory_space<vmem>>
    %5 = tpu.memref_slice %arg10[%c0_i32] : memref<8x!tpu.dma_semaphore, #tpu.memory_space<semaphore_mem>> -> memref<1x!tpu.dma_semaphore, #tpu.memory_space<semaphore_mem>>
    %6 = tpu.memref_squeeze %5 : memref<1x!tpu.dma_semaphore, #tpu.memory_space<semaphore_mem>> -> memref<!tpu.dma_semaphore, #tpu.memory_space<semaphore_mem>>
    tpu.enqueue_dma source(%3 : memref<1x32xf32, #tpu.memory_space<any>>) target(%4 : memref<1x32xf32, #tpu.memory_space<vmem>>) target_semaphore(%6 : memref<!tpu.dma_semaphore, #tpu.memory_space<semaphore_mem>>)
    %c1 = arith.constant 1 : index
    %7 = memref.load %arg0[%c1] : memref<8xi32, #tpu.memory_space<smem>>
    %c1_i32 = arith.constant 1 : i32
    %c0_i32_5 = arith.constant 0 : i32
    %8 = tpu.memref_slice %arg1[%7, %c0_i32_5] : memref<50x32xf32, #tpu.memory_space<any>> -> memref<1x32xf32, #tpu.memory_space<any>>
    %c8_i32 = arith.constant 8 : i32
    %c0_i32_6 = arith.constant 0 : i32
    %9 = tpu.memref_slice %arg9[%c8_i32, %c0_i32_6] : memref<64x32xf32, #tpu.memory_space<vmem>> -> memref<1x32xf32, #tpu.memory_space<vmem>>
    %10 = tpu.memref_slice %arg10[%c1_i32] : memref<8x!tpu.dma_semaphore, #tpu.memory_space<semaphore_mem>> -> memref<1x!tpu.dma_semaphore, #tpu.memory_space<semaphore_mem>>
    %11 = tpu.memref_squeeze %10 : memref<1x!tpu.dma_semaphore, #tpu.memory_space<semaphore_mem>> -> memref<!tpu.dma_semaphore, #tpu.memory_space<semaphore_mem>>
    tpu.enqueue_dma source(%8 : memref<1x32xf32, #tpu.memory_space<any>>) target(%9 : memref<1x32xf32, #tpu.memory_space<vmem>>) target_semaphore(%11 : memref<!tpu.dma_semaphore, #tpu.memory_space<semaphore_mem>>)
    %c2 = arith.constant 2 : index
    %12 = memref.load %arg0[%c2] : memref<8xi32, #tpu.memory_space<smem>>
    %c2_i32 = arith.constant 2 : i32
    %c0_i32_7 = arith.constant 0 : i32
    %13 = tpu.memref_slice %arg1[%12, %c0_i32_7] : memref<50x32xf32, #tpu.memory_space<any>> -> memref<1x32xf32, #tpu.memory_space<any>>
    %c16_i32 = arith.constant 16 : i32
    %c0_i32_8 = arith.constant 0 : i32
    %14 = tpu.memref_slice %arg9[%c16_i32, %c0_i32_8] : memref<64x32xf32, #tpu.memory_space<vmem>> -> memref<1x32xf32, #tpu.memory_space<vmem>>
    %15 = tpu.memref_slice %arg10[%c2_i32] : memref<8x!tpu.dma_semaphore, #tpu.memory_space<semaphore_mem>> -> memref<1x!tpu.dma_semaphore, #tpu.memory_space<semaphore_mem>>
    %16 = tpu.memref_squeeze %15 : memref<1x!tpu.dma_semaphore, #tpu.memory_space<semaphore_mem>> -> memref<!tpu.dma_semaphore, #tpu.memory_space<semaphore_mem>>
    tpu.enqueue_dma source(%13 : memref<1x32xf32, #tpu.memory_space<any>>) target(%14 : memref<1x32xf32, #tpu.memory_space<vmem>>) target_semaphore(%16 : memref<!tpu.dma_semaphore, #tpu.memory_space<semaphore_mem>>)
    %c3 = arith.constant 3 : index
    %17 = memref.load %arg0[%c3] : memref<8xi32, #tpu.memory_space<smem>>
    %c3_i32 = arith.constant 3 : i32
    %c0_i32_9 = arith.constant 0 : i32
    %18 = tpu.memref_slice %arg1[%17, %c0_i32_9] : memref<50x32xf32, #tpu.memory_space<any>> -> memref<1x32xf32, #tpu.memory_space<any>>
    %c24_i32 = arith.constant 24 : i32
    %c0_i32_10 = arith.constant 0 : i32
    %19 = tpu.memref_slice %arg9[%c24_i32, %c0_i32_10] : memref<64x32xf32, #tpu.memory_space<vmem>> -> memref<1x32xf32, #tpu.memory_space<vmem>>
    %20 = tpu.memref_slice %arg10[%c3_i32] : memref<8x!tpu.dma_semaphore, #tpu.memory_space<semaphore_mem>> -> memref<1x!tpu.dma_semaphore, #tpu.memory_space<semaphore_mem>>
    %21 = tpu.memref_squeeze %20 : memref<1x!tpu.dma_semaphore, #tpu.memory_space<semaphore_mem>> -> memref<!tpu.dma_semaphore, #tpu.memory_space<semaphore_mem>>
    tpu.enqueue_dma source(%18 : memref<1x32xf32, #tpu.memory_space<any>>) target(%19 : memref<1x32xf32, #tpu.memory_space<vmem>>) target_semaphore(%21 : memref<!tpu.dma_semaphore, #tpu.memory_space<semaphore_mem>>)
    %c4 = arith.constant 4 : index
    %22 = memref.load %arg0[%c4] : memref<8xi32, #tpu.memory_space<smem>>
    %c4_i32 = arith.constant 4 : i32
    %c0_i32_11 = arith.constant 0 : i32
    %23 = tpu.memref_slice %arg1[%22, %c0_i32_11] : memref<50x32xf32, #tpu.memory_space<any>> -> memref<1x32xf32, #tpu.memory_space<any>>
    %c32_i32 = arith.constant 32 : i32
    %c0_i32_12 = arith.constant 0 : i32
    %24 = tpu.memref_slice %arg9[%c32_i32, %c0_i32_12] : memref<64x32xf32, #tpu.memory_space<vmem>> -> memref<1x32xf32, #tpu.memory_space<vmem>>
    %25 = tpu.memref_slice %arg10[%c4_i32] : memref<8x!tpu.dma_semaphore, #tpu.memory_space<semaphore_mem>> -> memref<1x!tpu.dma_semaphore, #tpu.memory_space<semaphore_mem>>
    %26 = tpu.memref_squeeze %25 : memref<1x!tpu.dma_semaphore, #tpu.memory_space<semaphore_mem>> -> memref<!tpu.dma_semaphore, #tpu.memory_space<semaphore_mem>>
    tpu.enqueue_dma source(%23 : memref<1x32xf32, #tpu.memory_space<any>>) target(%24 : memref<1x32xf32, #tpu.memory_space<vmem>>) target_semaphore(%26 : memref<!tpu.dma_semaphore, #tpu.memory_space<semaphore_mem>>)
    %c5 = arith.constant 5 : index
    %27 = memref.load %arg0[%c5] : memref<8xi32, #tpu.memory_space<smem>>
    %c5_i32 = arith.constant 5 : i32
    %c0_i32_13 = arith.constant 0 : i32
    %28 = tpu.memref_slice %arg1[%27, %c0_i32_13] : memref<50x32xf32, #tpu.memory_space<any>> -> memref<1x32xf32, #tpu.memory_space<any>>
    %c40_i32 = arith.constant 40 : i32
    %c0_i32_14 = arith.constant 0 : i32
    %29 = tpu.memref_slice %arg9[%c40_i32, %c0_i32_14] : memref<64x32xf32, #tpu.memory_space<vmem>> -> memref<1x32xf32, #tpu.memory_space<vmem>>
    %30 = tpu.memref_slice %arg10[%c5_i32] : memref<8x!tpu.dma_semaphore, #tpu.memory_space<semaphore_mem>> -> memref<1x!tpu.dma_semaphore, #tpu.memory_space<semaphore_mem>>
    %31 = tpu.memref_squeeze %30 : memref<1x!tpu.dma_semaphore, #tpu.memory_space<semaphore_mem>> -> memref<!tpu.dma_semaphore, #tpu.memory_space<semaphore_mem>>
    tpu.enqueue_dma source(%28 : memref<1x32xf32, #tpu.memory_space<any>>) target(%29 : memref<1x32xf32, #tpu.memory_space<vmem>>) target_semaphore(%31 : memref<!tpu.dma_semaphore, #tpu.memory_space<semaphore_mem>>)
    %c6 = arith.constant 6 : index
    %32 = memref.load %arg0[%c6] : memref<8xi32, #tpu.memory_space<smem>>
    %c6_i32 = arith.constant 6 : i32
    %c0_i32_15 = arith.constant 0 : i32
    %33 = tpu.memref_slice %arg1[%32, %c0_i32_15] : memref<50x32xf32, #tpu.memory_space<any>> -> memref<1x32xf32, #tpu.memory_space<any>>
    %c48_i32 = arith.constant 48 : i32
    %c0_i32_16 = arith.constant 0 : i32
    %34 = tpu.memref_slice %arg9[%c48_i32, %c0_i32_16] : memref<64x32xf32, #tpu.memory_space<vmem>> -> memref<1x32xf32, #tpu.memory_space<vmem>>
    %35 = tpu.memref_slice %arg10[%c6_i32] : memref<8x!tpu.dma_semaphore, #tpu.memory_space<semaphore_mem>> -> memref<1x!tpu.dma_semaphore, #tpu.memory_space<semaphore_mem>>
    %36 = tpu.memref_squeeze %35 : memref<1x!tpu.dma_semaphore, #tpu.memory_space<semaphore_mem>> -> memref<!tpu.dma_semaphore, #tpu.memory_space<semaphore_mem>>
    tpu.enqueue_dma source(%33 : memref<1x32xf32, #tpu.memory_space<any>>) target(%34 : memref<1x32xf32, #tpu.memory_space<vmem>>) target_semaphore(%36 : memref<!tpu.dma_semaphore, #tpu.memory_space<semaphore_mem>>)
    %c7 = arith.constant 7 : index
    %37 = memref.load %arg0[%c7] : memref<8xi32, #tpu.memory_space<smem>>
    %c7_i32 = arith.constant 7 : i32
    %c0_i32_17 = arith.constant 0 : i32
    %38 = tpu.memref_slice %arg1[%37, %c0_i32_17] : memref<50x32xf32, #tpu.memory_space<any>> -> memref<1x32xf32, #tpu.memory_space<any>>
    %c56_i32 = arith.constant 56 : i32
    %c0_i32_18 = arith.constant 0 : i32
    %39 = tpu.memref_slice %arg9[%c56_i32, %c0_i32_18] : memref<64x32xf32, #tpu.memory_space<vmem>> -> memref<1x32xf32, #tpu.memory_space<vmem>>
    %40 = tpu.memref_slice %arg10[%c7_i32] : memref<8x!tpu.dma_semaphore, #tpu.memory_space<semaphore_mem>> -> memref<1x!tpu.dma_semaphore, #tpu.memory_space<semaphore_mem>>
    %41 = tpu.memref_squeeze %40 : memref<1x!tpu.dma_semaphore, #tpu.memory_space<semaphore_mem>> -> memref<!tpu.dma_semaphore, #tpu.memory_space<semaphore_mem>>
    tpu.enqueue_dma source(%38 : memref<1x32xf32, #tpu.memory_space<any>>) target(%39 : memref<1x32xf32, #tpu.memory_space<vmem>>) target_semaphore(%41 : memref<!tpu.dma_semaphore, #tpu.memory_space<semaphore_mem>>)
    %c0_i32_19 = arith.constant 0 : i32
    %c0_i32_20 = arith.constant 0 : i32
    %c0_i32_21 = arith.constant 0 : i32
    %42 = tpu.memref_slice %arg1[%c0_i32_20, %c0_i32_21] : memref<50x32xf32, #tpu.memory_space<any>> -> memref<1x32xf32, #tpu.memory_space<any>>
    %c0_i32_22 = arith.constant 0 : i32
    %c0_i32_23 = arith.constant 0 : i32
    %43 = tpu.memref_slice %arg9[%c0_i32_22, %c0_i32_23] : memref<64x32xf32, #tpu.memory_space<vmem>> -> memref<1x32xf32, #tpu.memory_space<vmem>>
    %44 = tpu.memref_slice %arg10[%c0_i32_19] : memref<8x!tpu.dma_semaphore, #tpu.memory_space<semaphore_mem>> -> memref<1x!tpu.dma_semaphore, #tpu.memory_space<semaphore_mem>>
    %45 = tpu.memref_squeeze %44 : memref<1x!tpu.dma_semaphore, #tpu.memory_space<semaphore_mem>> -> memref<!tpu.dma_semaphore, #tpu.memory_space<semaphore_mem>>
    tpu.wait_dma2 semaphore(%45 : memref<!tpu.dma_semaphore, #tpu.memory_space<semaphore_mem>>) src(%42 : memref<1x32xf32, #tpu.memory_space<any>>) dst(%43 : memref<1x32xf32, #tpu.memory_space<vmem>>)
    %c1_i32_24 = arith.constant 1 : i32
    %c0_i32_25 = arith.constant 0 : i32
    %c0_i32_26 = arith.constant 0 : i32
    %46 = tpu.memref_slice %arg1[%c0_i32_25, %c0_i32_26] : memref<50x32xf32, #tpu.memory_space<any>> -> memref<1x32xf32, #tpu.memory_space<any>>
    %c8_i32_27 = arith.constant 8 : i32
    %c0_i32_28 = arith.constant 0 : i32
    %47 = tpu.memref_slice %arg9[%c8_i32_27, %c0_i32_28] : memref<64x32xf32, #tpu.memory_space<vmem>> -> memref<1x32xf32, #tpu.memory_space<vmem>>
    %48 = tpu.memref_slice %arg10[%c1_i32_24] : memref<8x!tpu.dma_semaphore, #tpu.memory_space<semaphore_mem>> -> memref<1x!tpu.dma_semaphore, #tpu.memory_space<semaphore_mem>>
    %49 = tpu.memref_squeeze %48 : memref<1x!tpu.dma_semaphore, #tpu.memory_space<semaphore_mem>> -> memref<!tpu.dma_semaphore, #tpu.memory_space<semaphore_mem>>
    tpu.wait_dma2 semaphore(%49 : memref<!tpu.dma_semaphore, #tpu.memory_space<semaphore_mem>>) src(%46 : memref<1x32xf32, #tpu.memory_space<any>>) dst(%47 : memref<1x32xf32, #tpu.memory_space<vmem>>)
    %c2_i32_29 = arith.constant 2 : i32
    %c0_i32_30 = arith.constant 0 : i32
    %c0_i32_31 = arith.constant 0 : i32
    %50 = tpu.memref_slice %arg1[%c0_i32_30, %c0_i32_31] : memref<50x32xf32, #tpu.memory_space<any>> -> memref<1x32xf32, #tpu.memory_space<any>>
    %c16_i32_32 = arith.constant 16 : i32
    %c0_i32_33 = arith.constant 0 : i32
    %51 = tpu.memref_slice %arg9[%c16_i32_32, %c0_i32_33] : memref<64x32xf32, #tpu.memory_space<vmem>> -> memref<1x32xf32, #tpu.memory_space<vmem>>
    %52 = tpu.memref_slice %arg10[%c2_i32_29] : memref<8x!tpu.dma_semaphore, #tpu.memory_space<semaphore_mem>> -> memref<1x!tpu.dma_semaphore, #tpu.memory_space<semaphore_mem>>
    %53 = tpu.memref_squeeze %52 : memref<1x!tpu.dma_semaphore, #tpu.memory_space<semaphore_mem>> -> memref<!tpu.dma_semaphore, #tpu.memory_space<semaphore_mem>>
    tpu.wait_dma2 semaphore(%53 : memref<!tpu.dma_semaphore, #tpu.memory_space<semaphore_mem>>) src(%50 : memref<1x32xf32, #tpu.memory_space<any>>) dst(%51 : memref<1x32xf32, #tpu.memory_space<vmem>>)
    %c3_i32_34 = arith.constant 3 : i32
    %c0_i32_35 = arith.constant 0 : i32
    %c0_i32_36 = arith.constant 0 : i32
    %54 = tpu.memref_slice %arg1[%c0_i32_35, %c0_i32_36] : memref<50x32xf32, #tpu.memory_space<any>> -> memref<1x32xf32, #tpu.memory_space<any>>
    %c24_i32_37 = arith.constant 24 : i32
    %c0_i32_38 = arith.constant 0 : i32
    %55 = tpu.memref_slice %arg9[%c24_i32_37, %c0_i32_38] : memref<64x32xf32, #tpu.memory_space<vmem>> -> memref<1x32xf32, #tpu.memory_space<vmem>>
    %56 = tpu.memref_slice %arg10[%c3_i32_34] : memref<8x!tpu.dma_semaphore, #tpu.memory_space<semaphore_mem>> -> memref<1x!tpu.dma_semaphore, #tpu.memory_space<semaphore_mem>>
    %57 = tpu.memref_squeeze %56 : memref<1x!tpu.dma_semaphore, #tpu.memory_space<semaphore_mem>> -> memref<!tpu.dma_semaphore, #tpu.memory_space<semaphore_mem>>
    tpu.wait_dma2 semaphore(%57 : memref<!tpu.dma_semaphore, #tpu.memory_space<semaphore_mem>>) src(%54 : memref<1x32xf32, #tpu.memory_space<any>>) dst(%55 : memref<1x32xf32, #tpu.memory_space<vmem>>)
    %c4_i32_39 = arith.constant 4 : i32
    %c0_i32_40 = arith.constant 0 : i32
    %c0_i32_41 = arith.constant 0 : i32
    %58 = tpu.memref_slice %arg1[%c0_i32_40, %c0_i32_41] : memref<50x32xf32, #tpu.memory_space<any>> -> memref<1x32xf32, #tpu.memory_space<any>>
    %c32_i32_42 = arith.constant 32 : i32
    %c0_i32_43 = arith.constant 0 : i32
    %59 = tpu.memref_slice %arg9[%c32_i32_42, %c0_i32_43] : memref<64x32xf32, #tpu.memory_space<vmem>> -> memref<1x32xf32, #tpu.memory_space<vmem>>
    %60 = tpu.memref_slice %arg10[%c4_i32_39] : memref<8x!tpu.dma_semaphore, #tpu.memory_space<semaphore_mem>> -> memref<1x!tpu.dma_semaphore, #tpu.memory_space<semaphore_mem>>
    %61 = tpu.memref_squeeze %60 : memref<1x!tpu.dma_semaphore, #tpu.memory_space<semaphore_mem>> -> memref<!tpu.dma_semaphore, #tpu.memory_space<semaphore_mem>>
    tpu.wait_dma2 semaphore(%61 : memref<!tpu.dma_semaphore, #tpu.memory_space<semaphore_mem>>) src(%58 : memref<1x32xf32, #tpu.memory_space<any>>) dst(%59 : memref<1x32xf32, #tpu.memory_space<vmem>>)
    %c5_i32_44 = arith.constant 5 : i32
    %c0_i32_45 = arith.constant 0 : i32
    %c0_i32_46 = arith.constant 0 : i32
    %62 = tpu.memref_slice %arg1[%c0_i32_45, %c0_i32_46] : memref<50x32xf32, #tpu.memory_space<any>> -> memref<1x32xf32, #tpu.memory_space<any>>
    %c40_i32_47 = arith.constant 40 : i32
    %c0_i32_48 = arith.constant 0 : i32
    %63 = tpu.memref_slice %arg9[%c40_i32_47, %c0_i32_48] : memref<64x32xf32, #tpu.memory_space<vmem>> -> memref<1x32xf32, #tpu.memory_space<vmem>>
    %64 = tpu.memref_slice %arg10[%c5_i32_44] : memref<8x!tpu.dma_semaphore, #tpu.memory_space<semaphore_mem>> -> memref<1x!tpu.dma_semaphore, #tpu.memory_space<semaphore_mem>>
    %65 = tpu.memref_squeeze %64 : memref<1x!tpu.dma_semaphore, #tpu.memory_space<semaphore_mem>> -> memref<!tpu.dma_semaphore, #tpu.memory_space<semaphore_mem>>
    tpu.wait_dma2 semaphore(%65 : memref<!tpu.dma_semaphore, #tpu.memory_space<semaphore_mem>>) src(%62 : memref<1x32xf32, #tpu.memory_space<any>>) dst(%63 : memref<1x32xf32, #tpu.memory_space<vmem>>)
    %c6_i32_49 = arith.constant 6 : i32
    %c0_i32_50 = arith.constant 0 : i32
    %c0_i32_51 = arith.constant 0 : i32
    %66 = tpu.memref_slice %arg1[%c0_i32_50, %c0_i32_51] : memref<50x32xf32, #tpu.memory_space<any>> -> memref<1x32xf32, #tpu.memory_space<any>>
    %c48_i32_52 = arith.constant 48 : i32
    %c0_i32_53 = arith.constant 0 : i32
    %67 = tpu.memref_slice %arg9[%c48_i32_52, %c0_i32_53] : memref<64x32xf32, #tpu.memory_space<vmem>> -> memref<1x32xf32, #tpu.memory_space<vmem>>
    %68 = tpu.memref_slice %arg10[%c6_i32_49] : memref<8x!tpu.dma_semaphore, #tpu.memory_space<semaphore_mem>> -> memref<1x!tpu.dma_semaphore, #tpu.memory_space<semaphore_mem>>
    %69 = tpu.memref_squeeze %68 : memref<1x!tpu.dma_semaphore, #tpu.memory_space<semaphore_mem>> -> memref<!tpu.dma_semaphore, #tpu.memory_space<semaphore_mem>>
    tpu.wait_dma2 semaphore(%69 : memref<!tpu.dma_semaphore, #tpu.memory_space<semaphore_mem>>) src(%66 : memref<1x32xf32, #tpu.memory_space<any>>) dst(%67 : memref<1x32xf32, #tpu.memory_space<vmem>>)
    %c7_i32_54 = arith.constant 7 : i32
    %c0_i32_55 = arith.constant 0 : i32
    %c0_i32_56 = arith.constant 0 : i32
    %70 = tpu.memref_slice %arg1[%c0_i32_55, %c0_i32_56] : memref<50x32xf32, #tpu.memory_space<any>> -> memref<1x32xf32, #tpu.memory_space<any>>
    %c56_i32_57 = arith.constant 56 : i32
    %c0_i32_58 = arith.constant 0 : i32
    %71 = tpu.memref_slice %arg9[%c56_i32_57, %c0_i32_58] : memref<64x32xf32, #tpu.memory_space<vmem>> -> memref<1x32xf32, #tpu.memory_space<vmem>>
    %72 = tpu.memref_slice %arg10[%c7_i32_54] : memref<8x!tpu.dma_semaphore, #tpu.memory_space<semaphore_mem>> -> memref<1x!tpu.dma_semaphore, #tpu.memory_space<semaphore_mem>>
    %73 = tpu.memref_squeeze %72 : memref<1x!tpu.dma_semaphore, #tpu.memory_space<semaphore_mem>> -> memref<!tpu.dma_semaphore, #tpu.memory_space<semaphore_mem>>
    tpu.wait_dma2 semaphore(%73 : memref<!tpu.dma_semaphore, #tpu.memory_space<semaphore_mem>>) src(%70 : memref<1x32xf32, #tpu.memory_space<any>>) dst(%71 : memref<1x32xf32, #tpu.memory_space<vmem>>)
    %c0_59 = arith.constant 0 : index
    %c0_60 = arith.constant 0 : index
    %74 = vector.load %arg9[%c0_59, %c0_60] : memref<64x32xf32, #tpu.memory_space<vmem>>, vector<64x32xf32>
    %c0_61 = arith.constant 0 : index
    %c0_62 = arith.constant 0 : index
    %75 = vector.load %arg4[%c0_61, %c0_62] : memref<32x128xf32, #tpu.memory_space<vmem>>, vector<32x128xf32>
    %cst_63 = arith.constant dense<0.000000e+00> : vector<64x128xf32>
    %76 = tpu.matmul %74, %75, %cst_63 {dimension_numbers = #tpu.dot_dimension_numbers<[1], [0], [0], [1], [0, 0, 1, 1], [], []>} : vector<64x32xf32>, vector<32x128xf32>, vector<64x128xf32> -> vector<64x128xf32>
    %c0_64 = arith.constant 0 : index
    %c0_65 = arith.constant 0 : index
    %77 = vector.load %arg6[%c0_64, %c0_65] : memref<1x128xf32, #tpu.memory_space<vmem>>, vector<1x128xf32>
    %78 = vector.broadcast %77 : vector<1x128xf32> to vector<64x128xf32>
    %79 = arith.addf %76, %78 : vector<64x128xf32>
    %c0_66 = arith.constant 0 : index
    %c0_67 = arith.constant 0 : index
    %80 = vector.load %arg5[%c0_66, %c0_67] : memref<32x128xf32, #tpu.memory_space<vmem>>, vector<32x128xf32>
    %c0_68 = arith.constant 0 : index
    %c0_69 = arith.constant 0 : index
    %81 = vector.load %arg2[%c0_68, %c0_69] : memref<8x32xf32, #tpu.memory_space<vmem>>, vector<8x32xf32>
    %c0_70 = arith.constant 0 : index
    %c0_71 = arith.constant 0 : index
    %82 = vector.load %arg3[%c0_70, %c0_71] : memref<8x32xf32, #tpu.memory_space<vmem>>, vector<8x32xf32>
    %83 = vector.extract_strided_slice %79 {offsets = [0, 0], sizes = [8, 128], strides = [1, 1]} : vector<64x128xf32> to vector<8x128xf32>
    %cst_72 = arith.constant dense<0.000000e+00> : vector<8x128xf32>
    %84 = tpu.matmul %81, %80, %cst_72 {dimension_numbers = #tpu.dot_dimension_numbers<[1], [0], [0], [1], [0, 0, 1, 1], [], []>} : vector<8x32xf32>, vector<32x128xf32>, vector<8x128xf32> -> vector<8x128xf32>
    %85 = arith.addf %83, %84 : vector<8x128xf32>
    %86 = math.tanh %85 : vector<8x128xf32>
    %87 = vector.extract_strided_slice %86 {offsets = [0, 0], sizes = [8, 32], strides = [1, 1]} : vector<8x128xf32> to vector<8x32xf32>
    %cst_73 = arith.constant 5.000000e-01 : f32
    %88 = vector.broadcast %cst_73 : f32 to vector<8x32xf32>
    %89 = arith.mulf %88, %87 : vector<8x32xf32>
    %cst_74 = arith.constant 5.000000e-01 : f32
    %90 = vector.broadcast %cst_74 : f32 to vector<8x32xf32>
    %91 = arith.addf %89, %90 : vector<8x32xf32>
    %92 = vector.extract_strided_slice %86 {offsets = [0, 32], sizes = [8, 32], strides = [1, 1]} : vector<8x128xf32> to vector<8x32xf32>
    %cst_75 = arith.constant 5.000000e-01 : f32
    %93 = vector.broadcast %cst_75 : f32 to vector<8x32xf32>
    %94 = arith.mulf %93, %92 : vector<8x32xf32>
    %cst_76 = arith.constant 5.000000e-01 : f32
    %95 = vector.broadcast %cst_76 : f32 to vector<8x32xf32>
    %96 = arith.addf %94, %95 : vector<8x32xf32>
    %97 = vector.extract_strided_slice %86 {offsets = [0, 64], sizes = [8, 32], strides = [1, 1]} : vector<8x128xf32> to vector<8x32xf32>
    %98 = vector.extract_strided_slice %86 {offsets = [0, 96], sizes = [8, 32], strides = [1, 1]} : vector<8x128xf32> to vector<8x32xf32>
    %cst_77 = arith.constant 5.000000e-01 : f32
    %99 = vector.broadcast %cst_77 : f32 to vector<8x32xf32>
    %100 = arith.mulf %99, %98 : vector<8x32xf32>
    %cst_78 = arith.constant 5.000000e-01 : f32
    %101 = vector.broadcast %cst_78 : f32 to vector<8x32xf32>
    %102 = arith.addf %100, %101 : vector<8x32xf32>
    %103 = arith.mulf %96, %82 : vector<8x32xf32>
    %104 = arith.mulf %91, %97 : vector<8x32xf32>
    %105 = arith.addf %103, %104 : vector<8x32xf32>
    %106 = math.tanh %105 : vector<8x32xf32>
    %107 = arith.mulf %102, %106 : vector<8x32xf32>
    %108 = vector.extract_strided_slice %79 {offsets = [8, 0], sizes = [8, 128], strides = [1, 1]} : vector<64x128xf32> to vector<8x128xf32>
    %cst_79 = arith.constant dense<0.000000e+00> : vector<8x128xf32>
    %109 = tpu.matmul %107, %80, %cst_79 {dimension_numbers = #tpu.dot_dimension_numbers<[1], [0], [0], [1], [0, 0, 1, 1], [], []>} : vector<8x32xf32>, vector<32x128xf32>, vector<8x128xf32> -> vector<8x128xf32>
    %110 = arith.addf %108, %109 : vector<8x128xf32>
    %111 = math.tanh %110 : vector<8x128xf32>
    %112 = vector.extract_strided_slice %111 {offsets = [0, 0], sizes = [8, 32], strides = [1, 1]} : vector<8x128xf32> to vector<8x32xf32>
    %cst_80 = arith.constant 5.000000e-01 : f32
    %113 = vector.broadcast %cst_80 : f32 to vector<8x32xf32>
    %114 = arith.mulf %113, %112 : vector<8x32xf32>
    %cst_81 = arith.constant 5.000000e-01 : f32
    %115 = vector.broadcast %cst_81 : f32 to vector<8x32xf32>
    %116 = arith.addf %114, %115 : vector<8x32xf32>
    %117 = vector.extract_strided_slice %111 {offsets = [0, 32], sizes = [8, 32], strides = [1, 1]} : vector<8x128xf32> to vector<8x32xf32>
    %cst_82 = arith.constant 5.000000e-01 : f32
    %118 = vector.broadcast %cst_82 : f32 to vector<8x32xf32>
    %119 = arith.mulf %118, %117 : vector<8x32xf32>
    %cst_83 = arith.constant 5.000000e-01 : f32
    %120 = vector.broadcast %cst_83 : f32 to vector<8x32xf32>
    %121 = arith.addf %119, %120 : vector<8x32xf32>
    %122 = vector.extract_strided_slice %111 {offsets = [0, 64], sizes = [8, 32], strides = [1, 1]} : vector<8x128xf32> to vector<8x32xf32>
    %123 = vector.extract_strided_slice %111 {offsets = [0, 96], sizes = [8, 32], strides = [1, 1]} : vector<8x128xf32> to vector<8x32xf32>
    %cst_84 = arith.constant 5.000000e-01 : f32
    %124 = vector.broadcast %cst_84 : f32 to vector<8x32xf32>
    %125 = arith.mulf %124, %123 : vector<8x32xf32>
    %cst_85 = arith.constant 5.000000e-01 : f32
    %126 = vector.broadcast %cst_85 : f32 to vector<8x32xf32>
    %127 = arith.addf %125, %126 : vector<8x32xf32>
    %128 = arith.mulf %121, %105 : vector<8x32xf32>
    %129 = arith.mulf %116, %122 : vector<8x32xf32>
    %130 = arith.addf %128, %129 : vector<8x32xf32>
    %131 = math.tanh %130 : vector<8x32xf32>
    %132 = arith.mulf %127, %131 : vector<8x32xf32>
    %133 = vector.extract_strided_slice %79 {offsets = [16, 0], sizes = [8, 128], strides = [1, 1]} : vector<64x128xf32> to vector<8x128xf32>
    %cst_86 = arith.constant dense<0.000000e+00> : vector<8x128xf32>
    %134 = tpu.matmul %132, %80, %cst_86 {dimension_numbers = #tpu.dot_dimension_numbers<[1], [0], [0], [1], [0, 0, 1, 1], [], []>} : vector<8x32xf32>, vector<32x128xf32>, vector<8x128xf32> -> vector<8x128xf32>
    %135 = arith.addf %133, %134 : vector<8x128xf32>
    %136 = math.tanh %135 : vector<8x128xf32>
    %137 = vector.extract_strided_slice %136 {offsets = [0, 0], sizes = [8, 32], strides = [1, 1]} : vector<8x128xf32> to vector<8x32xf32>
    %cst_87 = arith.constant 5.000000e-01 : f32
    %138 = vector.broadcast %cst_87 : f32 to vector<8x32xf32>
    %139 = arith.mulf %138, %137 : vector<8x32xf32>
    %cst_88 = arith.constant 5.000000e-01 : f32
    %140 = vector.broadcast %cst_88 : f32 to vector<8x32xf32>
    %141 = arith.addf %139, %140 : vector<8x32xf32>
    %142 = vector.extract_strided_slice %136 {offsets = [0, 32], sizes = [8, 32], strides = [1, 1]} : vector<8x128xf32> to vector<8x32xf32>
    %cst_89 = arith.constant 5.000000e-01 : f32
    %143 = vector.broadcast %cst_89 : f32 to vector<8x32xf32>
    %144 = arith.mulf %143, %142 : vector<8x32xf32>
    %cst_90 = arith.constant 5.000000e-01 : f32
    %145 = vector.broadcast %cst_90 : f32 to vector<8x32xf32>
    %146 = arith.addf %144, %145 : vector<8x32xf32>
    %147 = vector.extract_strided_slice %136 {offsets = [0, 64], sizes = [8, 32], strides = [1, 1]} : vector<8x128xf32> to vector<8x32xf32>
    %148 = vector.extract_strided_slice %136 {offsets = [0, 96], sizes = [8, 32], strides = [1, 1]} : vector<8x128xf32> to vector<8x32xf32>
    %cst_91 = arith.constant 5.000000e-01 : f32
    %149 = vector.broadcast %cst_91 : f32 to vector<8x32xf32>
    %150 = arith.mulf %149, %148 : vector<8x32xf32>
    %cst_92 = arith.constant 5.000000e-01 : f32
    %151 = vector.broadcast %cst_92 : f32 to vector<8x32xf32>
    %152 = arith.addf %150, %151 : vector<8x32xf32>
    %153 = arith.mulf %146, %130 : vector<8x32xf32>
    %154 = arith.mulf %141, %147 : vector<8x32xf32>
    %155 = arith.addf %153, %154 : vector<8x32xf32>
    %156 = math.tanh %155 : vector<8x32xf32>
    %157 = arith.mulf %152, %156 : vector<8x32xf32>
    %158 = vector.extract_strided_slice %79 {offsets = [24, 0], sizes = [8, 128], strides = [1, 1]} : vector<64x128xf32> to vector<8x128xf32>
    %cst_93 = arith.constant dense<0.000000e+00> : vector<8x128xf32>
    %159 = tpu.matmul %157, %80, %cst_93 {dimension_numbers = #tpu.dot_dimension_numbers<[1], [0], [0], [1], [0, 0, 1, 1], [], []>} : vector<8x32xf32>, vector<32x128xf32>, vector<8x128xf32> -> vector<8x128xf32>
    %160 = arith.addf %158, %159 : vector<8x128xf32>
    %161 = math.tanh %160 : vector<8x128xf32>
    %162 = vector.extract_strided_slice %161 {offsets = [0, 0], sizes = [8, 32], strides = [1, 1]} : vector<8x128xf32> to vector<8x32xf32>
    %cst_94 = arith.constant 5.000000e-01 : f32
    %163 = vector.broadcast %cst_94 : f32 to vector<8x32xf32>
    %164 = arith.mulf %163, %162 : vector<8x32xf32>
    %cst_95 = arith.constant 5.000000e-01 : f32
    %165 = vector.broadcast %cst_95 : f32 to vector<8x32xf32>
    %166 = arith.addf %164, %165 : vector<8x32xf32>
    %167 = vector.extract_strided_slice %161 {offsets = [0, 32], sizes = [8, 32], strides = [1, 1]} : vector<8x128xf32> to vector<8x32xf32>
    %cst_96 = arith.constant 5.000000e-01 : f32
    %168 = vector.broadcast %cst_96 : f32 to vector<8x32xf32>
    %169 = arith.mulf %168, %167 : vector<8x32xf32>
    %cst_97 = arith.constant 5.000000e-01 : f32
    %170 = vector.broadcast %cst_97 : f32 to vector<8x32xf32>
    %171 = arith.addf %169, %170 : vector<8x32xf32>
    %172 = vector.extract_strided_slice %161 {offsets = [0, 64], sizes = [8, 32], strides = [1, 1]} : vector<8x128xf32> to vector<8x32xf32>
    %173 = vector.extract_strided_slice %161 {offsets = [0, 96], sizes = [8, 32], strides = [1, 1]} : vector<8x128xf32> to vector<8x32xf32>
    %cst_98 = arith.constant 5.000000e-01 : f32
    %174 = vector.broadcast %cst_98 : f32 to vector<8x32xf32>
    %175 = arith.mulf %174, %173 : vector<8x32xf32>
    %cst_99 = arith.constant 5.000000e-01 : f32
    %176 = vector.broadcast %cst_99 : f32 to vector<8x32xf32>
    %177 = arith.addf %175, %176 : vector<8x32xf32>
    %178 = arith.mulf %171, %155 : vector<8x32xf32>
    %179 = arith.mulf %166, %172 : vector<8x32xf32>
    %180 = arith.addf %178, %179 : vector<8x32xf32>
    %181 = math.tanh %180 : vector<8x32xf32>
    %182 = arith.mulf %177, %181 : vector<8x32xf32>
    %183 = vector.extract_strided_slice %79 {offsets = [32, 0], sizes = [8, 128], strides = [1, 1]} : vector<64x128xf32> to vector<8x128xf32>
    %cst_100 = arith.constant dense<0.000000e+00> : vector<8x128xf32>
    %184 = tpu.matmul %182, %80, %cst_100 {dimension_numbers = #tpu.dot_dimension_numbers<[1], [0], [0], [1], [0, 0, 1, 1], [], []>} : vector<8x32xf32>, vector<32x128xf32>, vector<8x128xf32> -> vector<8x128xf32>
    %185 = arith.addf %183, %184 : vector<8x128xf32>
    %186 = math.tanh %185 : vector<8x128xf32>
    %187 = vector.extract_strided_slice %186 {offsets = [0, 0], sizes = [8, 32], strides = [1, 1]} : vector<8x128xf32> to vector<8x32xf32>
    %cst_101 = arith.constant 5.000000e-01 : f32
    %188 = vector.broadcast %cst_101 : f32 to vector<8x32xf32>
    %189 = arith.mulf %188, %187 : vector<8x32xf32>
    %cst_102 = arith.constant 5.000000e-01 : f32
    %190 = vector.broadcast %cst_102 : f32 to vector<8x32xf32>
    %191 = arith.addf %189, %190 : vector<8x32xf32>
    %192 = vector.extract_strided_slice %186 {offsets = [0, 32], sizes = [8, 32], strides = [1, 1]} : vector<8x128xf32> to vector<8x32xf32>
    %cst_103 = arith.constant 5.000000e-01 : f32
    %193 = vector.broadcast %cst_103 : f32 to vector<8x32xf32>
    %194 = arith.mulf %193, %192 : vector<8x32xf32>
    %cst_104 = arith.constant 5.000000e-01 : f32
    %195 = vector.broadcast %cst_104 : f32 to vector<8x32xf32>
    %196 = arith.addf %194, %195 : vector<8x32xf32>
    %197 = vector.extract_strided_slice %186 {offsets = [0, 64], sizes = [8, 32], strides = [1, 1]} : vector<8x128xf32> to vector<8x32xf32>
    %198 = vector.extract_strided_slice %186 {offsets = [0, 96], sizes = [8, 32], strides = [1, 1]} : vector<8x128xf32> to vector<8x32xf32>
    %cst_105 = arith.constant 5.000000e-01 : f32
    %199 = vector.broadcast %cst_105 : f32 to vector<8x32xf32>
    %200 = arith.mulf %199, %198 : vector<8x32xf32>
    %cst_106 = arith.constant 5.000000e-01 : f32
    %201 = vector.broadcast %cst_106 : f32 to vector<8x32xf32>
    %202 = arith.addf %200, %201 : vector<8x32xf32>
    %203 = arith.mulf %196, %180 : vector<8x32xf32>
    %204 = arith.mulf %191, %197 : vector<8x32xf32>
    %205 = arith.addf %203, %204 : vector<8x32xf32>
    %206 = math.tanh %205 : vector<8x32xf32>
    %207 = arith.mulf %202, %206 : vector<8x32xf32>
    %208 = vector.extract_strided_slice %79 {offsets = [40, 0], sizes = [8, 128], strides = [1, 1]} : vector<64x128xf32> to vector<8x128xf32>
    %cst_107 = arith.constant dense<0.000000e+00> : vector<8x128xf32>
    %209 = tpu.matmul %207, %80, %cst_107 {dimension_numbers = #tpu.dot_dimension_numbers<[1], [0], [0], [1], [0, 0, 1, 1], [], []>} : vector<8x32xf32>, vector<32x128xf32>, vector<8x128xf32> -> vector<8x128xf32>
    %210 = arith.addf %208, %209 : vector<8x128xf32>
    %211 = math.tanh %210 : vector<8x128xf32>
    %212 = vector.extract_strided_slice %211 {offsets = [0, 0], sizes = [8, 32], strides = [1, 1]} : vector<8x128xf32> to vector<8x32xf32>
    %cst_108 = arith.constant 5.000000e-01 : f32
    %213 = vector.broadcast %cst_108 : f32 to vector<8x32xf32>
    %214 = arith.mulf %213, %212 : vector<8x32xf32>
    %cst_109 = arith.constant 5.000000e-01 : f32
    %215 = vector.broadcast %cst_109 : f32 to vector<8x32xf32>
    %216 = arith.addf %214, %215 : vector<8x32xf32>
    %217 = vector.extract_strided_slice %211 {offsets = [0, 32], sizes = [8, 32], strides = [1, 1]} : vector<8x128xf32> to vector<8x32xf32>
    %cst_110 = arith.constant 5.000000e-01 : f32
    %218 = vector.broadcast %cst_110 : f32 to vector<8x32xf32>
    %219 = arith.mulf %218, %217 : vector<8x32xf32>
    %cst_111 = arith.constant 5.000000e-01 : f32
    %220 = vector.broadcast %cst_111 : f32 to vector<8x32xf32>
    %221 = arith.addf %219, %220 : vector<8x32xf32>
    %222 = vector.extract_strided_slice %211 {offsets = [0, 64], sizes = [8, 32], strides = [1, 1]} : vector<8x128xf32> to vector<8x32xf32>
    %223 = vector.extract_strided_slice %211 {offsets = [0, 96], sizes = [8, 32], strides = [1, 1]} : vector<8x128xf32> to vector<8x32xf32>
    %cst_112 = arith.constant 5.000000e-01 : f32
    %224 = vector.broadcast %cst_112 : f32 to vector<8x32xf32>
    %225 = arith.mulf %224, %223 : vector<8x32xf32>
    %cst_113 = arith.constant 5.000000e-01 : f32
    %226 = vector.broadcast %cst_113 : f32 to vector<8x32xf32>
    %227 = arith.addf %225, %226 : vector<8x32xf32>
    %228 = arith.mulf %221, %205 : vector<8x32xf32>
    %229 = arith.mulf %216, %222 : vector<8x32xf32>
    %230 = arith.addf %228, %229 : vector<8x32xf32>
    %231 = math.tanh %230 : vector<8x32xf32>
    %232 = arith.mulf %227, %231 : vector<8x32xf32>
    %233 = vector.extract_strided_slice %79 {offsets = [48, 0], sizes = [8, 128], strides = [1, 1]} : vector<64x128xf32> to vector<8x128xf32>
    %cst_114 = arith.constant dense<0.000000e+00> : vector<8x128xf32>
    %234 = tpu.matmul %232, %80, %cst_114 {dimension_numbers = #tpu.dot_dimension_numbers<[1], [0], [0], [1], [0, 0, 1, 1], [], []>} : vector<8x32xf32>, vector<32x128xf32>, vector<8x128xf32> -> vector<8x128xf32>
    %235 = arith.addf %233, %234 : vector<8x128xf32>
    %236 = math.tanh %235 : vector<8x128xf32>
    %237 = vector.extract_strided_slice %236 {offsets = [0, 0], sizes = [8, 32], strides = [1, 1]} : vector<8x128xf32> to vector<8x32xf32>
    %cst_115 = arith.constant 5.000000e-01 : f32
    %238 = vector.broadcast %cst_115 : f32 to vector<8x32xf32>
    %239 = arith.mulf %238, %237 : vector<8x32xf32>
    %cst_116 = arith.constant 5.000000e-01 : f32
    %240 = vector.broadcast %cst_116 : f32 to vector<8x32xf32>
    %241 = arith.addf %239, %240 : vector<8x32xf32>
    %242 = vector.extract_strided_slice %236 {offsets = [0, 32], sizes = [8, 32], strides = [1, 1]} : vector<8x128xf32> to vector<8x32xf32>
    %cst_117 = arith.constant 5.000000e-01 : f32
    %243 = vector.broadcast %cst_117 : f32 to vector<8x32xf32>
    %244 = arith.mulf %243, %242 : vector<8x32xf32>
    %cst_118 = arith.constant 5.000000e-01 : f32
    %245 = vector.broadcast %cst_118 : f32 to vector<8x32xf32>
    %246 = arith.addf %244, %245 : vector<8x32xf32>
    %247 = vector.extract_strided_slice %236 {offsets = [0, 64], sizes = [8, 32], strides = [1, 1]} : vector<8x128xf32> to vector<8x32xf32>
    %248 = vector.extract_strided_slice %236 {offsets = [0, 96], sizes = [8, 32], strides = [1, 1]} : vector<8x128xf32> to vector<8x32xf32>
    %cst_119 = arith.constant 5.000000e-01 : f32
    %249 = vector.broadcast %cst_119 : f32 to vector<8x32xf32>
    %250 = arith.mulf %249, %248 : vector<8x32xf32>
    %cst_120 = arith.constant 5.000000e-01 : f32
    %251 = vector.broadcast %cst_120 : f32 to vector<8x32xf32>
    %252 = arith.addf %250, %251 : vector<8x32xf32>
    %253 = arith.mulf %246, %230 : vector<8x32xf32>
    %254 = arith.mulf %241, %247 : vector<8x32xf32>
    %255 = arith.addf %253, %254 : vector<8x32xf32>
    %256 = math.tanh %255 : vector<8x32xf32>
    %257 = arith.mulf %252, %256 : vector<8x32xf32>
    %258 = vector.extract_strided_slice %79 {offsets = [56, 0], sizes = [8, 128], strides = [1, 1]} : vector<64x128xf32> to vector<8x128xf32>
    %cst_121 = arith.constant dense<0.000000e+00> : vector<8x128xf32>
    %259 = tpu.matmul %257, %80, %cst_121 {dimension_numbers = #tpu.dot_dimension_numbers<[1], [0], [0], [1], [0, 0, 1, 1], [], []>} : vector<8x32xf32>, vector<32x128xf32>, vector<8x128xf32> -> vector<8x128xf32>
    %260 = arith.addf %258, %259 : vector<8x128xf32>
    %261 = math.tanh %260 : vector<8x128xf32>
    %262 = vector.extract_strided_slice %261 {offsets = [0, 0], sizes = [8, 32], strides = [1, 1]} : vector<8x128xf32> to vector<8x32xf32>
    %cst_122 = arith.constant 5.000000e-01 : f32
    %263 = vector.broadcast %cst_122 : f32 to vector<8x32xf32>
    %264 = arith.mulf %263, %262 : vector<8x32xf32>
    %cst_123 = arith.constant 5.000000e-01 : f32
    %265 = vector.broadcast %cst_123 : f32 to vector<8x32xf32>
    %266 = arith.addf %264, %265 : vector<8x32xf32>
    %267 = vector.extract_strided_slice %261 {offsets = [0, 32], sizes = [8, 32], strides = [1, 1]} : vector<8x128xf32> to vector<8x32xf32>
    %cst_124 = arith.constant 5.000000e-01 : f32
    %268 = vector.broadcast %cst_124 : f32 to vector<8x32xf32>
    %269 = arith.mulf %268, %267 : vector<8x32xf32>
    %cst_125 = arith.constant 5.000000e-01 : f32
    %270 = vector.broadcast %cst_125 : f32 to vector<8x32xf32>
    %271 = arith.addf %269, %270 : vector<8x32xf32>
    %272 = vector.extract_strided_slice %261 {offsets = [0, 64], sizes = [8, 32], strides = [1, 1]} : vector<8x128xf32> to vector<8x32xf32>
    %273 = vector.extract_strided_slice %261 {offsets = [0, 96], sizes = [8, 32], strides = [1, 1]} : vector<8x128xf32> to vector<8x32xf32>
    %cst_126 = arith.constant 5.000000e-01 : f32
    %274 = vector.broadcast %cst_126 : f32 to vector<8x32xf32>
    %275 = arith.mulf %274, %273 : vector<8x32xf32>
    %cst_127 = arith.constant 5.000000e-01 : f32
    %276 = vector.broadcast %cst_127 : f32 to vector<8x32xf32>
    %277 = arith.addf %275, %276 : vector<8x32xf32>
    %278 = arith.mulf %271, %255 : vector<8x32xf32>
    %279 = arith.mulf %266, %272 : vector<8x32xf32>
    %280 = arith.addf %278, %279 : vector<8x32xf32>
    %281 = math.tanh %280 : vector<8x32xf32>
    %282 = arith.mulf %277, %281 : vector<8x32xf32>
    %c0_128 = arith.constant 0 : index
    %c0_129 = arith.constant 0 : index
    %283 = vector.load %arg7[%c0_128, %c0_129] : memref<8x32xf32, #tpu.memory_space<vmem>>, vector<8x32xf32>
    tpu.vector_store %arg7[%c0_128, %c0_129], %282 {strides = array<i32>} : memref<8x32xf32, #tpu.memory_space<vmem>>, vector<8x32xf32>,
    %c0_130 = arith.constant 0 : index
    %c0_131 = arith.constant 0 : index
    %284 = vector.load %arg8[%c0_130, %c0_131] : memref<8x32xf32, #tpu.memory_space<vmem>>, vector<8x32xf32>
    tpu.vector_store %arg8[%c0_130, %c0_131], %280 {strides = array<i32>} : memref<8x32xf32, #tpu.memory_space<vmem>>, vector<8x32xf32>,
    return
  }
}

</mosaic_0001>

<bundles_post_ra>
// kernel: mul.17
= control target key start
LH: loop header
LB: loop body
LE: loop exit
PB: predicated region body
PF: predicated region fallthrough
CT: control target
= control target key end

     0   :  { %3 = vsyncpa [#allocation1], 0  ;;  %s44_s9 = smov [#allocation0]   ;;  %s69_s0 = inlined_call_operand.hbm [shape: f32[1,128], index: 0, kind: input, shape index: {}]   ;;  %s70_s1 = inlined_call_operand.vmem [shape: f32[1,128], index: 1, kind: input, shape index: {}]   ;;  %s71_s2 = inlined_call_operand.vmem [shape: f32[1,128], index: 2, kind: output, shape index: {}]  }
   0x1   :  { %s8_s10 = sshll.u32 %s44_s9, 4  ;;  %s9_s10 = int_to_ptr.vmem [resolvable:$true] %s8_s10 }
   0x2   :  { %s30_s11 = scalar_lea.vmem %s9_s10, 16  ;;  %s34_s12 = scalar_lea.vmem %s9_s10, 32 }
   0x3   :  { %p31_p0 = scmp.ne.s32.totalorder %s9_s10, %s30_s11  ;;  %p35_p1 = scmp.lt.s32.totalorder %s9_s10, %s9_s10 }
   0x4   :  { %p36_p2 = scmp.lt.s32.totalorder %s34_s12, %s30_s11 }
   0x6   :  { %p37_p3 = por %p36_p2, %p35_p1 }
   0x8   :  { %p38_p4 = pnand %p37_p3, %p31_p0 }
   0xa   :  { %41 = shalt.err (!%p38_p4)
}
   0xb   :  { %11 = dma.hbm_to_vmem [thread:$0]  %s69_s0, 16, %s9_s10, [#allocation1]  }
   0xc   :  { %42 = dma.done.wait [#allocation1], 16  }
   0xd   :  { %43 = vsyncadd [#allocation1], 4294967280  ;;  %v13_v0 = vld [vmem:[#allocation0] sm:$0x1] }
   0xe   :  { %v14_v1 = vld [vmem:[%s70_s1] sm:$0x1] }
   0xf   :  { %v17_v2 = vmul.f32 %v14_v1, %v13_v0 }
  0x11   :  { %19 = vst [vmem:[%s71_s2] sm:$0x1] %v17_v2 }
  0x12   :  { %20 = vsyncpa [#allocation1], 1 }

// kernel: lstm_classifier_forward.1
= control target key start
LH: loop header
LB: loop body
LE: loop exit
PB: predicated region body
PF: predicated region fallthrough
CT: control target
= control target key end

     0   :  { %14 = vsyncpa [#allocation5], 0  ;;  %s2110_s0 = inlined_call_operand.vmem [shape: s32[8], index: 0, kind: input, shape index: {}]   ;;  %s2111_s1 = inlined_call_operand.vmem [shape: f32[50,32], index: 1, kind: input, shape index: {}]   ;;  %s2112_s2 = inlined_call_operand.vmem [shape: f32[8,32], index: 2, kind: input, shape index: {}]   ;;  %s2113_s3 = inlined_call_operand.vmem [shape: f32[8,32], index: 3, kind: input, shape index: {}]   ;;  %s2114_s4 = inlined_call_operand.vmem [shape: f32[32,128], index: 4, kind: input, shape index: {}]   ;;  %s2115_s5 = inlined_call_operand.vmem [shape: f32[32,128], index: 5, kind: input, shape index: {}]   ;;  %s2116_s6 = inlined_call_operand.vmem [shape: f32[1,128], index: 6, kind: input, shape index: {}]   ;;  %s2117_s7 = inlined_call_operand.vmem [shape: f32[8,32], index: 7, kind: output, shape index: {0}]   ;;  %s2118_s8 = inlined_call_operand.vmem [shape: f32[8,32], index: 8, kind: output, shape index: {1}]  }
   0x1   :  { %s21_s29 = sshll.u32 %s2110_s0, 4  ;;  %s22_s29 = int_to_ptr.vmem [resolvable:$true] %s21_s29 }
   0x2   :  { %s1786_s30 = scalar_lea.vmem %s22_s29, 16  ;;  %p1791_p1 = scmp.lt.s32.totalorder %s22_s29, %s22_s29 }
   0x3   :  { %p1787_p0 = scmp.ne.s32.totalorder %s22_s29, %s1786_s30  ;;  %p1792_p2 = scmp.lt.s32.totalorder %s1786_s30, %s1786_s30 }
   0x5   :  { %p1793_p3 = por %p1792_p2, %p1791_p1 }
   0x7   :  { %p1794_p4 = pnand %p1793_p3, %p1787_p0 }
   0x9   :  { %1797 = shalt.err (!%p1794_p4)
}
   0xa   :  { %s1816_s9 = smov [#allocation4]  }
   0xb   :  { %24 = dma.vmem_to_smem %s22_s29, 16, %s1816_s9, [#allocation5]  }
   0xc   :  { %1798 = dma.done.wait [#allocation5], 16  }
   0xd   :  { %1799 = vsyncadd [#allocation5], 4294967280 }
   0xe   :  { %38 = sfence }
   0xf   :  { %vm39_vm0 = vcmask 261120   ;;  %s48_s10 = sld [smem:[#allocation4]]  ;;  %v1817_v0 = vmov 0.0  }
  0x10   :  { %40 = vst.msk [vmem:[#allocation2] sm:$0xff] %vm39_vm0, %v1817_v0  ;;  %41 = vst.msk [vmem:[#allocation2 + $0x8] sm:$0xff] %vm39_vm0, %v1817_v0 }
  0x11   :  { %42 = vst.msk [vmem:[#allocation2 + $0x10] sm:$0xff] %vm39_vm0, %v1817_v0  ;;  %43 = vst.msk [vmem:[#allocation2 + $0x18] sm:$0xff] %vm39_vm0, %v1817_v0 }
  0x12   :  { %44 = vst.msk [vmem:[#allocation2 + $0x20] sm:$0xff] %vm39_vm0, %v1817_v0  ;;  %45 = vst.msk [vmem:[#allocation2 + $0x28] sm:$0xff] %vm39_vm0, %v1817_v0 }
  0x13   :  { %46 = vst.msk [vmem:[#allocation2 + $0x30] sm:$0xff] %vm39_vm0, %v1817_v0  ;;  %47 = vst.msk [vmem:[#allocation2 + $0x38] sm:$0xff] %vm39_vm0, %v1817_v0 }
  0x15   :  { %s49_s12 = scalar_lea.vmem %s2111_s1, %s48_s10 }
  0x16   :  { %v68_v1 = vld [vmem:[%s49_s12] sm:$0x1] }
  0x17   :  { %69 = vst [vmem:[#allocation2] sm:$0x1] %v68_v1 }
  0x18   :  { %95 = vsyncadd [#allocation3], 16  ;;  %s1556_s13 = sld [smem:[#allocation4 + $0x1]] }
  0x1e   :  { %s97_s16 = scalar_lea.vmem %s2111_s1, %s1556_s13 }
  0x1f   :  { %v118_v2 = vld [vmem:[%s97_s16] sm:$0x1] }
  0x20   :  { %119 = vst [vmem:[#allocation2 + $0x8] sm:$0x1] %v118_v2 }
  0x21   :  { %145 = vsyncadd [#allocation3 + $0x1], 16  ;;  %s1557_s17 = sld [smem:[#allocation4 + $0x2]] }
  0x27   :  { %s147_s20 = scalar_lea.vmem %s2111_s1, %s1557_s17 }
  0x28   :  { %v168_v3 = vld [vmem:[%s147_s20] sm:$0x1] }
  0x29   :  { %169 = vst [vmem:[#allocation2 + $0x10] sm:$0x1] %v168_v3 }
  0x2a   :  { %195 = vsyncadd [#allocation3 + $0x2], 16  ;;  %s1558_s21 = sld [smem:[#allocation4 + $0x3]] }
  0x30   :  { %s197_s24 = scalar_lea.vmem %s2111_s1, %s1558_s21 }
  0x31   :  { %v218_v4 = vld [vmem:[%s197_s24] sm:$0x1] }
  0x32   :  { %219 = vst [vmem:[#allocation2 + $0x18] sm:$0x1] %v218_v4 }
  0x33   :  { %245 = vsyncadd [#allocation3 + $0x3], 16  ;;  %s1559_s25 = sld [smem:[#allocation4 + $0x4]] }
  0x39   :  { %s247_s28 = scalar_lea.vmem %s2111_s1, %s1559_s25 }
  0x3a   :  { %v268_v5 = vld [vmem:[%s247_s28] sm:$0x1] }
  0x3b   :  { %269 = vst [vmem:[#allocation2 + $0x20] sm:$0x1] %v268_v5 }
  0x3c   :  { %295 = vsyncadd [#allocation3 + $0x4], 16  ;;  %s1560_s29 = sld [smem:[#allocation4 + $0x5]] }
  0x42   :  { %s297_s10 = scalar_lea.vmem %s2111_s1, %s1560_s29 }
  0x43   :  { %v318_v6 = vld [vmem:[%s297_s10] sm:$0x1] }
  0x44   :  { %319 = vst [vmem:[#allocation2 + $0x28] sm:$0x1] %v318_v6 }
  0x45   :  { %345 = vsyncadd [#allocation3 + $0x5], 16  ;;  %s1561_s0 = sld [smem:[#allocation4 + $0x6]] }
  0x4b   :  { %s347_s13 = scalar_lea.vmem %s2111_s1, %s1561_s0 }
  0x4c   :  { %v368_v7 = vld [vmem:[%s347_s13] sm:$0x1] }
  0x4d   :  { %369 = vst [vmem:[#allocation2 + $0x30] sm:$0x1] %v368_v7 }
  0x4e   :  { %395 = vsyncadd [#allocation3 + $0x6], 16  ;;  %s1562_s14 = sld [smem:[#allocation4 + $0x7]] }
  0x54   :  { %s397_s17 = scalar_lea.vmem %s2111_s1, %s1562_s14 }
  0x55   :  { %v418_v8 = vld [vmem:[%s397_s17] sm:$0x1] }
  0x56   :  { %419 = vst [vmem:[#allocation2 + $0x38] sm:$0x1] %v418_v8 }
  0x57   :  { %445 = vsyncadd [#allocation3 + $0x7], 16 }
  0x58   :  { %1800 = dma.done.wait [#allocation3], 16 }
  0x59   :  { %1801 = vsyncadd [#allocation3], 4294967280 }
  0x5a   :  { %1802 = dma.done.wait [#allocation3 + $0x1], 16 }
  0x5b   :  { %1803 = vsyncadd [#allocation3 + $0x1], 4294967280 }
  0x5c   :  { %1804 = dma.done.wait [#allocation3 + $0x2], 16 }
  0x5d   :  { %1805 = vsyncadd [#allocation3 + $0x2], 4294967280 }
  0x5e   :  { %1806 = dma.done.wait [#allocation3 + $0x3], 16 }
  0x5f   :  { %1807 = vsyncadd [#allocation3 + $0x3], 4294967280 }
  0x60   :  { %1808 = dma.done.wait [#allocation3 + $0x4], 16 }
  0x61   :  { %1809 = vsyncadd [#allocation3 + $0x4], 4294967280 }
  0x62   :  { %1810 = dma.done.wait [#allocation3 + $0x5], 16 }
  0x63   :  { %1811 = vsyncadd [#allocation3 + $0x5], 4294967280 }
  0x64   :  { %1812 = dma.done.wait [#allocation3 + $0x6], 16 }
  0x65   :  { %1813 = vsyncadd [#allocation3 + $0x6], 4294967280 }
  0x66   :  { %1814 = dma.done.wait [#allocation3 + $0x7], 16 }
  0x67   :  { %1815 = vsyncadd [#allocation3 + $0x7], 4294967280  ;;  %1660 = vmatprep.subr.mxu1 %v1817_v0  ;;  %vm1818_vm1 = vmmov 0   ;;  %v474_v9 = vld [vmem:[%s2114_s4 + $0x18] sm:$0xff]  ;;  %v473_v10 = vld [vmem:[%s2114_s4 + $0x10] sm:$0xff]  ;;  %s1820_s14 = smov 32  }
  0x68   :  { %1668 = vmatprep.mubr.msk.f32.mxu1 %vm1818_vm1, %v1817_v0  ;;  %v1922_v11 = vld [vmem:[%s2115_s5 + $0x18] sm:$0xff]  ;;  %1640 = vmatprep.subr.mxu0 %v474_v9  ;;  %v1928_v12 = vld [vmem:[%s2115_s5 + $0x10] sm:$0xff]  ;;  %v472_v13 = vld [vmem:[%s2114_s4 + $0x8] sm:$0xff] }
  0x69   :  { %1661 = vmatpush3.msra.mxu1 %v1922_v11  ;;  %1641 = vmatpush3.msra.mxu0 %v474_v9  ;;  %v463_v14 = vld [vmem:[#allocation2] sm:$0xff]  ;;  %v1938_v15 = vld [vmem:[%s2115_s5 + $0x8] sm:$0xff]  ;;  %v465_v53 = vld [vmem:[#allocation2 + $0x10] sm:$0xff] }
  0x6a   :  { %1662 = vmatprep.subr.mxu1 %v1817_v0  ;;  %1642 = vmatprep.subr.mxu0 %v473_v10  ;;  %v471_v16 = vld [vmem:[%s2114_s4] sm:$0xff]  ;;  %v464_v18 = vld [vmem:[#allocation2 + $0x8] sm:$0xff]  ;;  %v466_v54 = vld [vmem:[#allocation2 + $0x18] sm:$0xff] }
  0x6b   :  { %1663 = vmatpush3.msra.mxu1 %v1928_v12  ;;  %1643 = vmatpush3.msra.mxu0 %v473_v10  ;;  %v1948_v17 = vld [vmem:[%s2115_s5] sm:$0xff]  ;;  %s1819_s5 = smov 64   ;;  %v468_v56 = vld [vmem:[#allocation2 + $0x28] sm:$0xff]  ;;  %v469_v57 = vld [vmem:[#allocation2 + $0x30] sm:$0xff] }
  0x6c   :  { %1664 = vmatprep.subr.mxu1 %v1817_v0  ;;  %1644 = vmatprep.subr.mxu0 %v472_v13  ;;  %v615_v19 = vld [vmem:[%s2112_s2] sm:$0xff]  ;;  %v470_v58 = vld [vmem:[#allocation2 + $0x38] sm:$0xff] }
  0x6d   :  { %1648 = vmatprep.mubr.msk.f32.mxu0 %vm39_vm0, %v463_v14  ;;  %1645 = vmatpush3.msra.mxu0 %v472_v13  ;;  %v1981_v22 = vld [vmem:[%s2116_s6] ss:$0 sm:$0xff] }
  0x6e   :  { %1665 = vmatpush3.msra.mxu1 %v1938_v15  ;;  %1646 = vmatprep.subr.mxu0 %v471_v16  ;;  %v616_v28 = vld [vmem:[%s2113_s3] sm:$0xff]  ;;  %s1821_s3 = smov 96  }
  0x6f   :  { %1666 = vmatprep.subr.mxu1 %v1817_v0  ;;  %1647 = vmatpush3.msra.mxu0 %v471_v16  ;;  %v467_v55 = vld [vmem:[#allocation2 + $0x20] sm:$0xff] }
  0x70   :  { %1667 = vmatpush3.msra.mxu1 %v1948_v17  ;;  %1649 = vmatmul.mubr.msk.f32.vlgmr.msra.gmra.mxu0 %vm39_vm0, %v464_v18 }
  0x71   :  { %1669 = vmatmul.mubr.msk.f32.vlgmr.msra.gmra.mxu1 %vm39_vm0, %v615_v19  ;;  %1671 = vmatprep.subr.mxu1 %v1817_v0 }
  0x72   :  { %1679 = vmatprep.mubr.msk.f32.mxu1 %vm1818_vm1, %v1817_v0  ;;  %1672 = vmatpush3.msra.mxu1 %v1922_v11 }
  0x73   :  { %1682 = vmatprep.subr.mxu0 %v1817_v0  ;;  %1673 = vmatprep.subr.mxu1 %v1817_v0 }
  0x74   :  { %1683 = vmatpush3.msra.mxu0 %v1922_v11  ;;  %1674 = vmatpush3.msra.mxu1 %v1928_v12 }
  0x75   :  { %1684 = vmatprep.subr.mxu0 %v1817_v0  ;;  %1675 = vmatprep.subr.mxu1 %v1817_v0 }
  0x76   :  { %1685 = vmatpush3.msra.mxu0 %v1928_v12  ;;  %1676 = vmatpush3.msra.mxu1 %v1938_v15 }
  0x77   :  { %1686 = vmatprep.subr.mxu0 %v1817_v0  ;;  %1677 = vmatprep.subr.mxu1 %v1817_v0 }
  0x78   :  { %1687 = vmatpush3.msra.mxu0 %v1938_v15  ;;  %1678 = vmatpush3.msra.mxu1 %v1948_v17 }
  0x79   :  { %1688 = vmatprep.subr.mxu0 %v1817_v0  ;;  %1693 = vmatprep.subr.mxu1 %v1817_v0 }
  0x7a   :  { %1689 = vmatpush3.msra.mxu0 %v1948_v17  ;;  %1651 = vmatprep.mubr.msk.f32.mxu0 %vm39_vm0, %v465_v53 }
  0x7b   :  { %1704 = vmatprep.subr.mxu0 %v1817_v0  ;;  %1652 = vmatmul.mubr.msk.f32.gmra.mxu0 %vm39_vm0, %v466_v54 }
  0x7c   :  { %1654 = vmatprep.mubr.msk.f32.mxu0 %vm39_vm0, %v467_v55 }
  0x7f   :  { %1655 = vmatmul.mubr.msk.f32.gmra.mxu0 %vm39_vm0, %v468_v56 }
  0x80   :  { %1657 = vmatprep.mubr.msk.f32.mxu0 %vm39_vm0, %v469_v57 }
  0x83   :  { %1658 = vmatmul.mubr.msk.f32.gmra.mxu0 %vm39_vm0, %v470_v58 }
  0x84   :  { %1690 = vmatprep.mubr.msk.f32.mxu0 %vm1818_vm1, %v1817_v0 }
 0x130   :  { %v1650_v20 = vpop.f32.mrf.mxu0 }
 0x131   :  { %v686_v21 = vpop.f32.mrf.mxu1  ;;  %v578_v41 = vadd.f32 %v1650_v20, %v1981_v22 }
 0x132   :  { %v572_v23 = vpop.f32.mrf.mxu0 }
 0x133   :  { %v1670_v24 = vpop.f32.mrf.mxu1  ;;  %v573_v25 = vadd.f32 %v1981_v22, %v572_v23 }
 0x135   :  { %v690_v26 = vadd.f32 %v686_v21, %v573_v25 }
 0x137   :  { %1754 = vtanh.f32 %v690_v26 }
 0x13b   :  { %v1653_v63 = vpop.f32.mrf.mxu0 }
 0x13d   :  { %v582_v1 = vpop.f32.mrf.mxu0 }
 0x13e   :  { %v583_v6 = vadd.f32 %v1981_v22, %v582_v1 }
 0x13f   :  { %v2027_v2 = vpop.f32.mrf.mxu0 }
 0x141   :  { %v2029_v3 = vpop.f32.mrf.mxu0 }
 0x143   :  { %v2031_v4 = vpop.f32.mrf.mxu0 }
 0x144   :  { %v1755_v27 = vpop.eup %1754 }
 0x145   :  { %700 = vrot.lane.b32.xlu0 %v1755_v27, %s1819_s5  ;;  %v692_v29 = vmul.f32 0.5, %v1755_v27  ;;  %v2033_v5 = vpop.f32.mrf.mxu0  ;;  %v588_v27 = vadd.f32 %v1653_v63, %v1981_v22 }
 0x147   :  { %v693_v30 = vadd.f32 0.5, %v692_v29 }
 0x149   :  { %695 = vrot.lane.b32.xlu0 %v616_v28, %s1820_s14 }
 0x1b7   :  { %v701_v31 = vpop.permute.xlu0 %700 }
 0x1b8   :  { %v703_v32 = vmul.f32 %v701_v31, %v693_v30 }
 0x1ba   :  { %705 = vrot.lane.b32.xlu1 %v703_v32, %s1820_s14 }
 0x1bb   :  { %v696_v33 = vpop.permute.xlu0 %695 }
 0x1bc   :  { %v698_v34 = vmul.f32 %v696_v33, %v693_v30 }
 0x22c   :  { %v706_v35 = vpop.permute.xlu1 %705 }
 0x22d   :  { %v708_v36 = vadd.f32 %v706_v35, %v698_v34 }
 0x22f   :  { %1756 = vtanh.f32 %v708_v36 }
 0x23c   :  { %v1757_v37 = vpop.eup %1756 }
 0x23d   :  { %711 = vrot.lane.b32.xlu1 %v1757_v37, %s1819_s5 }
 0x2af   :  { %v712_v38 = vpop.permute.xlu1 %711 }
 0x2b0   :  { %v714_v39 = vmul.f32 %v712_v38, %v693_v30 }
 0x2b2   :  { %716 = vrot.lane.b32.xlu0 %v714_v39, %s1820_s14 }
 0x324   :  { %v717_v40 = vpop.permute.xlu0 %716 }
 0x325   :  { %1680 = vmatmul.mubr.msk.f32.vlgmr.msra.gmra.mxu1 %vm39_vm0, %v717_v40 }
 0x326   :  { %1694 = vmatpush3.msra.mxu1 %v1922_v11  ;;  %1701 = vmatprep.mubr.msk.f32.mxu1 %vm1818_vm1, %v1817_v0 }
 0x327   :  { %1695 = vmatprep.subr.mxu1 %v1817_v0 }
 0x328   :  { %1696 = vmatpush3.msra.mxu1 %v1928_v12 }
 0x329   :  { %1697 = vmatprep.subr.mxu1 %v1817_v0 }
 0x32a   :  { %1698 = vmatpush3.msra.mxu1 %v1938_v15 }
 0x32b   :  { %1699 = vmatprep.subr.mxu1 %v1817_v0 }
 0x32c   :  { %1700 = vmatpush3.msra.mxu1 %v1948_v17 }
 0x32d   :  { %1715 = vmatprep.subr.mxu1 %v1817_v0 }
 0x3e5   :  { %v786_v42 = vpop.f32.mrf.mxu1 }
 0x3e6   :  { %v790_v43 = vadd.f32 %v786_v42, %v578_v41 }
 0x3e7   :  { %v1681_v44 = vpop.f32.mrf.mxu1 }
 0x3e8   :  { %1758 = vtanh.f32 %v790_v43  ;;  %v593_v43 = vadd.f32 %v1981_v22, %v2029_v3 }
 0x3f5   :  { %v1759_v45 = vpop.eup %1758 }
 0x3f6   :  { %796 = vrot.lane.b32.xlu1 %v1759_v45, %s1819_s5  ;;  %v792_v46 = vmul.f32 0.5, %v1759_v45 }
 0x3f8   :  { %v793_v47 = vadd.f32 0.5, %v792_v46 }
 0x3fa   :  { %v794_v50 = vmul.f32 %v793_v47, %v708_v36 }
 0x468   :  { %v797_v48 = vpop.permute.xlu1 %796 }
 0x469   :  { %v799_v49 = vmul.f32 %v797_v48, %v793_v47 }
 0x46b   :  { %801 = vrot.lane.b32.xlu0 %v799_v49, %s1820_s14 }
 0x4dd   :  { %v802_v51 = vpop.permute.xlu0 %801 }
 0x4de   :  { %v804_v52 = vadd.f32 %v802_v51, %v794_v50 }
 0x4e0   :  { %1760 = vtanh.f32 %v804_v52 }
 0x4ed   :  { %v1761_v59 = vpop.eup %1760 }
 0x4ee   :  { %807 = vrot.lane.b32.xlu1 %v1761_v59, %s1819_s5  ;;  %v598_v59 = vadd.f32 %v2027_v2, %v1981_v22 }
 0x560   :  { %v808_v60 = vpop.permute.xlu1 %807 }
 0x561   :  { %v810_v61 = vmul.f32 %v808_v60, %v793_v47 }
 0x563   :  { %812 = vrot.lane.b32.xlu0 %v810_v61, %s1820_s14 }
 0x5d5   :  { %v813_v62 = vpop.permute.xlu0 %812 }
 0x5d6   :  { %1691 = vmatmul.mubr.msk.f32.vlgmr.msra.gmra.mxu0 %vm39_vm0, %v813_v62 }
 0x5d7   :  { %1705 = vmatpush3.msra.mxu0 %v1922_v11  ;;  %1712 = vmatprep.mubr.msk.f32.mxu0 %vm1818_vm1, %v1817_v0 }
 0x5d8   :  { %1706 = vmatprep.subr.mxu0 %v1817_v0 }
 0x5d9   :  { %1707 = vmatpush3.msra.mxu0 %v1928_v12 }
 0x5da   :  { %1708 = vmatprep.subr.mxu0 %v1817_v0 }
 0x5db   :  { %1709 = vmatpush3.msra.mxu0 %v1938_v15 }
 0x5dc   :  { %1710 = vmatprep.subr.mxu0 %v1817_v0 }
 0x5dd   :  { %1711 = vmatpush3.msra.mxu0 %v1948_v17 }
 0x5de   :  { %1726 = vmatprep.subr.mxu0 %v1817_v0 }
 0x696   :  { %v882_v7 = vpop.f32.mrf.mxu0 }
 0x697   :  { %v886_v8 = vadd.f32 %v882_v7, %v583_v6 }
 0x698   :  { %v1692_v9 = vpop.f32.mrf.mxu0 }
 0x699   :  { %1762 = vtanh.f32 %v886_v8  ;;  %v603_v9 = vadd.f32 %v1981_v22, %v2033_v5 }
 0x6a6   :  { %v1763_v10 = vpop.eup %1762 }
 0x6a7   :  { %892 = vrot.lane.b32.xlu1 %v1763_v10, %s1819_s5  ;;  %v888_v13 = vmul.f32 0.5, %v1763_v10 }
 0x6a9   :  { %v889_v14 = vadd.f32 0.5, %v888_v13 }
 0x6ab   :  { %v890_v19 = vmul.f32 %v889_v14, %v804_v52 }
 0x719   :  { %v893_v16 = vpop.permute.xlu1 %892 }
 0x71a   :  { %v895_v18 = vmul.f32 %v893_v16, %v889_v14 }
 0x71c   :  { %897 = vrot.lane.b32.xlu0 %v895_v18, %s1820_s14 }
 0x78e   :  { %v898_v20 = vpop.permute.xlu0 %897 }
 0x78f   :  { %v900_v21 = vadd.f32 %v898_v20, %v890_v19 }
 0x791   :  { %1764 = vtanh.f32 %v900_v21 }
 0x79e   :  { %v1765_v23 = vpop.eup %1764 }
 0x79f   :  { %903 = vrot.lane.b32.xlu1 %v1765_v23, %s1819_s5 }
 0x811   :  { %v904_v24 = vpop.permute.xlu1 %903 }
 0x812   :  { %v906_v25 = vmul.f32 %v904_v24, %v889_v14 }
 0x814   :  { %908 = vrot.lane.b32.xlu0 %v906_v25, %s1820_s14 }
 0x886   :  { %v909_v26 = vpop.permute.xlu0 %908 }
 0x887   :  { %1702 = vmatmul.mubr.msk.f32.vlgmr.msra.gmra.mxu1 %vm39_vm0, %v909_v26 }
 0x888   :  { %1716 = vmatpush3.msra.mxu1 %v1922_v11  ;;  %1723 = vmatprep.mubr.msk.f32.mxu1 %vm1818_vm1, %v1817_v0 }
 0x889   :  { %1717 = vmatprep.subr.mxu1 %v1817_v0 }
 0x88a   :  { %1718 = vmatpush3.msra.mxu1 %v1928_v12 }
 0x88b   :  { %1719 = vmatprep.subr.mxu1 %v1817_v0 }
 0x88c   :  { %1720 = vmatpush3.msra.mxu1 %v1938_v15 }
 0x88d   :  { %1721 = vmatprep.subr.mxu1 %v1817_v0 }
 0x88e   :  { %1722 = vmatpush3.msra.mxu1 %v1948_v17 }
 0x88f   :  { %1737 = vmatprep.subr.mxu1 %v1817_v0 }
 0x947   :  { %v978_v28 = vpop.f32.mrf.mxu1 }
 0x948   :  { %v982_v29 = vadd.f32 %v978_v28, %v588_v27 }
 0x949   :  { %v1703_v30 = vpop.f32.mrf.mxu1 }
 0x94a   :  { %1766 = vtanh.f32 %v982_v29  ;;  %v608_v29 = vadd.f32 %v2031_v4, %v1981_v22 }
 0x957   :  { %v1767_v31 = vpop.eup %1766 }
 0x958   :  { %988 = vrot.lane.b32.xlu1 %v1767_v31, %s1819_s5  ;;  %v984_v32 = vmul.f32 0.5, %v1767_v31 }
 0x95a   :  { %v985_v33 = vadd.f32 0.5, %v984_v32 }
 0x95c   :  { %v986_v36 = vmul.f32 %v985_v33, %v900_v21 }
 0x9ca   :  { %v989_v34 = vpop.permute.xlu1 %988 }
 0x9cb   :  { %v991_v35 = vmul.f32 %v989_v34, %v985_v33 }
 0x9cd   :  { %993 = vrot.lane.b32.xlu0 %v991_v35, %s1820_s14 }
 0xa3f   :  { %v994_v37 = vpop.permute.xlu0 %993 }
 0xa40   :  { %v996_v38 = vadd.f32 %v994_v37, %v986_v36 }
 0xa42   :  { %1768 = vtanh.f32 %v996_v38 }
 0xa4f   :  { %v1769_v39 = vpop.eup %1768 }
 0xa50   :  { %999 = vrot.lane.b32.xlu1 %v1769_v39, %s1819_s5 }
 0xac2   :  { %v1000_v40 = vpop.permute.xlu1 %999 }
 0xac3   :  { %v1002_v41 = vmul.f32 %v1000_v40, %v985_v33 }
 0xac5   :  { %1004 = vrot.lane.b32.xlu0 %v1002_v41, %s1820_s14 }
 0xb37   :  { %v1005_v42 = vpop.permute.xlu0 %1004 }
 0xb38   :  { %1713 = vmatmul.mubr.msk.f32.vlgmr.msra.gmra.mxu0 %vm39_vm0, %v1005_v42 }
 0xb39   :  { %1727 = vmatpush3.msra.mxu0 %v1922_v11  ;;  %1734 = vmatprep.mubr.msk.f32.mxu0 %vm1818_vm1, %v1817_v0 }
 0xb3a   :  { %1728 = vmatprep.subr.mxu0 %v1817_v0 }
 0xb3b   :  { %1729 = vmatpush3.msra.mxu0 %v1928_v12 }
 0xb3c   :  { %1730 = vmatprep.subr.mxu0 %v1817_v0 }
 0xb3d   :  { %1731 = vmatpush3.msra.mxu0 %v1938_v15 }
 0xb3e   :  { %1732 = vmatprep.subr.mxu0 %v1817_v0 }
 0xb3f   :  { %1733 = vmatpush3.msra.mxu0 %v1948_v17 }
 0xbf8   :  { %v1074_v44 = vpop.f32.mrf.mxu0 }
 0xbf9   :  { %v1078_v45 = vadd.f32 %v1074_v44, %v593_v43 }
 0xbfa   :  { %v1714_v46 = vpop.f32.mrf.mxu0 }
 0xbfb   :  { %1770 = vtanh.f32 %v1078_v45 }
 0xc08   :  { %v1771_v47 = vpop.eup %1770 }
 0xc09   :  { %1084 = vrot.lane.b32.xlu1 %v1771_v47, %s1819_s5  ;;  %v1080_v48 = vmul.f32 0.5, %v1771_v47 }
 0xc0b   :  { %v1081_v49 = vadd.f32 0.5, %v1080_v48 }
 0xc0d   :  { %v1082_v52 = vmul.f32 %v1081_v49, %v996_v38 }
 0xc7b   :  { %v1085_v50 = vpop.permute.xlu1 %1084 }
 0xc7c   :  { %v1087_v51 = vmul.f32 %v1085_v50, %v1081_v49 }
 0xc7e   :  { %1089 = vrot.lane.b32.xlu0 %v1087_v51, %s1820_s14 }
 0xcf0   :  { %v1090_v53 = vpop.permute.xlu0 %1089 }
 0xcf1   :  { %v1092_v54 = vadd.f32 %v1090_v53, %v1082_v52 }
 0xcf3   :  { %1772 = vtanh.f32 %v1092_v54 }
 0xd00   :  { %v1773_v55 = vpop.eup %1772 }
 0xd01   :  { %1095 = vrot.lane.b32.xlu1 %v1773_v55, %s1819_s5 }
 0xd73   :  { %v1096_v56 = vpop.permute.xlu1 %1095 }
 0xd74   :  { %v1098_v57 = vmul.f32 %v1096_v56, %v1081_v49 }
 0xd76   :  { %1100 = vrot.lane.b32.xlu0 %v1098_v57, %s1820_s14 }
 0xde8   :  { %v1101_v58 = vpop.permute.xlu0 %1100 }
 0xde9   :  { %1724 = vmatmul.mubr.msk.f32.vlgmr.msra.gmra.mxu1 %vm39_vm0, %v1101_v58 }
 0xdea   :  { %1738 = vmatpush3.msra.mxu1 %v1922_v11  ;;  %1745 = vmatprep.mubr.msk.f32.mxu1 %vm1818_vm1, %v1817_v0 }
 0xdeb   :  { %1739 = vmatprep.subr.mxu1 %v1817_v0 }
 0xdec   :  { %1740 = vmatpush3.msra.mxu1 %v1928_v12 }
 0xded   :  { %1741 = vmatprep.subr.mxu1 %v1817_v0 }
 0xdee   :  { %1742 = vmatpush3.msra.mxu1 %v1938_v15 }
 0xdef   :  { %1743 = vmatprep.subr.mxu1 %v1817_v0 }
 0xdf0   :  { %1744 = vmatpush3.msra.mxu1 %v1948_v17 }
 0xea9   :  { %v1170_v60 = vpop.f32.mrf.mxu1 }
 0xeaa   :  { %v1174_v11 = vadd.f32 %v1170_v60, %v598_v59 }
 0xeab   :  { %v1725_v61 = vpop.f32.mrf.mxu1 }
 0xeac   :  { %1774 = vtanh.f32 %v1174_v11 }
 0xeb9   :  { %v1775_v62 = vpop.eup %1774 }
 0xeba   :  { %1180 = vrot.lane.b32.xlu1 %v1775_v62, %s1819_s5  ;;  %v1176_v63 = vmul.f32 0.5, %v1775_v62 }
 0xebc   :  { %v1177_v12 = vadd.f32 0.5, %v1176_v63 }
 0xebe   :  { %v1178_v15 = vmul.f32 %v1177_v12, %v1092_v54 }
 0xf2c   :  { %v1181_v1 = vpop.permute.xlu1 %1180 }
 0xf2d   :  { %v1183_v3 = vmul.f32 %v1181_v1, %v1177_v12 }
 0xf2f   :  { %1185 = vrot.lane.b32.xlu0 %v1183_v3, %s1820_s14 }
 0xfa1   :  { %v1186_v0 = vpop.permute.xlu0 %1185 }
 0xfa2   :  { %v1188_v6 = vadd.f32 %v1186_v0, %v1178_v15 }
 0xfa4   :  { %1776 = vtanh.f32 %v1188_v6 }
 0xfb1   :  { %v1777_v17 = vpop.eup %1776 }
 0xfb2   :  { %1191 = vrot.lane.b32.xlu1 %v1777_v17, %s1819_s5 }
0x1024   :  { %v1192_v2 = vpop.permute.xlu1 %1191 }
0x1025   :  { %v1194_v7 = vmul.f32 %v1192_v2, %v1177_v12 }
0x1027   :  { %1196 = vrot.lane.b32.xlu0 %v1194_v7, %s1820_s14 }
0x1099   :  { %v1197_v8 = vpop.permute.xlu0 %1196 }
0x109a   :  { %1735 = vmatmul.mubr.msk.f32.vlgmr.msra.gmra.mxu0 %vm39_vm0, %v1197_v8 }
0x115a   :  { %v1266_v10 = vpop.f32.mrf.mxu0 }
0x115b   :  { %v1270_v13 = vadd.f32 %v1266_v10, %v603_v9 }
0x115c   :  { %v1736_v14 = vpop.f32.mrf.mxu0 }
0x115d   :  { %1778 = vtanh.f32 %v1270_v13 }
0x116a   :  { %v1779_v16 = vpop.eup %1778 }
0x116b   :  { %1276 = vrot.lane.b32.xlu1 %v1779_v16, %s1819_s5  ;;  %v1272_v18 = vmul.f32 0.5, %v1779_v16 }
0x116d   :  { %v1273_v19 = vadd.f32 0.5, %v1272_v18 }
0x116f   :  { %v1274_v23 = vmul.f32 %v1273_v19, %v1188_v6 }
0x11dd   :  { %v1277_v20 = vpop.permute.xlu1 %1276 }
0x11de   :  { %v1279_v21 = vmul.f32 %v1277_v20, %v1273_v19 }
0x11e0   :  { %1281 = vrot.lane.b32.xlu0 %v1279_v21, %s1820_s14 }
0x1252   :  { %v1282_v24 = vpop.permute.xlu0 %1281 }
0x1253   :  { %v1284_v25 = vadd.f32 %v1282_v24, %v1274_v23 }
0x1255   :  { %1780 = vtanh.f32 %v1284_v25 }
0x1262   :  { %v1781_v26 = vpop.eup %1780 }
0x1263   :  { %1287 = vrot.lane.b32.xlu1 %v1781_v26, %s1819_s5 }
0x12d5   :  { %v1288_v5 = vpop.permute.xlu1 %1287 }
0x12d6   :  { %v1290_v27 = vmul.f32 %v1288_v5, %v1273_v19 }
0x12d8   :  { %1292 = vrot.lane.b32.xlu0 %v1290_v27, %s1820_s14 }
0x134a   :  { %v1293_v28 = vpop.permute.xlu0 %1292 }
0x134b   :  { %1746 = vmatmul.mubr.msk.f32.vlgmr.msra.gmra.mxu1 %vm39_vm0, %v1293_v28 }
0x140b   :  { %v1362_v30 = vpop.f32.mrf.mxu1 }
0x140c   :  { %v1366_v31 = vadd.f32 %v1362_v30, %v608_v29 }
0x140d   :  { %v1747_v32 = vpop.f32.mrf.mxu1 }
0x140e   :  { %1782 = vtanh.f32 %v1366_v31 }
0x141b   :  { %v1783_v33 = vpop.eup %1782 }
0x141c   :  { %1372 = vrot.lane.b32.xlu1 %v1783_v33, %s1819_s5  ;;  %v1368_v34 = vmul.f32 0.5, %v1783_v33 }
0x141e   :  { %v1369_v35 = vadd.f32 0.5, %v1368_v34 }
0x1420   :  { %v1370_v38 = vmul.f32 %v1369_v35, %v1284_v25 }
0x148e   :  { %v1373_v36 = vpop.permute.xlu1 %1372 }
0x148f   :  { %v1375_v37 = vmul.f32 %v1373_v36, %v1369_v35 }
0x1491   :  { %1377 = vrot.lane.b32.xlu0 %v1375_v37, %s1820_s14 }
0x1503   :  { %v1378_v39 = vpop.permute.xlu0 %1377 }
0x1504   :  { %v1380_v40 = vadd.f32 %v1378_v39, %v1370_v38 }
0x1506   :  { %1784 = vtanh.f32 %v1380_v40 }
0x1513   :  { %v1785_v41 = vpop.eup %1784 }
0x1514   :  { %1383 = vrot.lane.b32.xlu1 %v1785_v41, %s1819_s5 }
0x1518   :  { %1393 = vrot.lane.b32.xlu1 %v1380_v40, %s1821_s3 }
0x1586   :  { %v1384_v22 = vpop.permute.xlu1 %1383 }
0x1587   :  { %v1386_v4 = vmul.f32 %v1384_v22, %v1369_v35 }
0x1589   :  { %1388 = vrot.lane.b32.xlu0 %v1386_v4, %s1820_s14 }
0x158a   :  { %v1394_v42 = vpop.permute.xlu1 %1393 }
0x158b   :  { %1396 = vst.msk [vmem:[%s2118_s8] sm:$0xff] %vm39_vm0, %v1394_v42 }
0x15fb   :  { %v1389_v43 = vpop.permute.xlu0 %1388 }
0x15fc   :  { %1391 = vst.msk [vmem:[%s2117_s7] sm:$0xff] %vm39_vm0, %v1389_v43 }
0x15fd   :  { %1405 = vsyncpa [#allocation5], 1 }
0x15fe   :  { %1406 = vsyncmov [#allocation3] }
0x1601   :  { %s1407_s1 = vpop.sfrf %1406 }
0x1602   :  { %p1580_p5 = scmp.ne.s32.totalorder %s1407_s1, 0 }
0x1604   :  { %1411 = shalt.err (%p1580_p5)  }
0x1605   :  { %1413 = vsyncmov [#allocation3 + $0x1] }
0x1608   :  { %s1414_s18 = vpop.sfrf %1413 }
0x1609   :  { %p1581_p6 = scmp.ne.s32.totalorder %s1414_s18, 0 }
0x160b   :  { %1418 = shalt.err (%p1581_p6)  }
0x160c   :  { %1420 = vsyncmov [#allocation3 + $0x2] }
0x160f   :  { %s1421_s19 = vpop.sfrf %1420 }
0x1610   :  { %p1582_p7 = scmp.ne.s32.totalorder %s1421_s19, 0 }
0x1612   :  { %1425 = shalt.err (%p1582_p7)  }
0x1613   :  { %1427 = vsyncmov [#allocation3 + $0x3] }
0x1616   :  { %s1428_s8 = vpop.sfrf %1427 }
0x1617   :  { %p1583_p8 = scmp.ne.s32.totalorder %s1428_s8, 0 }
0x1619   :  { %1432 = shalt.err (%p1583_p8)  }
0x161a   :  { %1434 = vsyncmov [#allocation3 + $0x4] }
0x161d   :  { %s1435_s20 = vpop.sfrf %1434 }
0x161e   :  { %p1584_p9 = scmp.ne.s32.totalorder %s1435_s20, 0 }
0x1620   :  { %1439 = shalt.err (%p1584_p9)  }
0x1621   :  { %1441 = vsyncmov [#allocation3 + $0x5] }
0x1624   :  { %s1442_s7 = vpop.sfrf %1441 }
0x1625   :  { %p1585_p10 = scmp.ne.s32.totalorder %s1442_s7, 0 }
0x1627   :  { %1446 = shalt.err (%p1585_p10)  }
0x1628   :  { %1448 = vsyncmov [#allocation3 + $0x6] }
0x162b   :  { %s1449_s21 = vpop.sfrf %1448 }
0x162c   :  { %p1586_p11 = scmp.ne.s32.totalorder %s1449_s21, 0 }
0x162e   :  { %1453 = shalt.err (%p1586_p11)  }
0x162f   :  { %1455 = vsyncmov [#allocation3 + $0x7] }
0x1632   :  { %s1456_s22 = vpop.sfrf %1455 }
0x1633   :  { %p1587_p12 = scmp.ne.s32.totalorder %s1456_s22, 0 }
0x1635   :  { %1460 = shalt.err (%p1587_p12)  }

</bundles_post_ra>
